<compile_context>
chip_gen: v7x
topology: tpu7x:2x2x1
jax: 0.10.0
libtpu: 0.0.40
codegen_flags: <defaults>
</compile_context>

<pallas_src>
import functools
import math

import jax
import jax.numpy as jnp
from jax import lax
from jax.experimental import pallas as pl
from jax.experimental.pallas import tpu as pltpu


def _lstm_chunk_kernel(xg_ref, whh_ref, h0_ref, c0_ref,
                       ys_ref, hN_ref, cN_ref,
                       h_sc, c_sc, *,
                       hidden_size, time_block, seq_len, unroll):
    H = hidden_size
    TT = time_block
    chunk = pl.program_id(0)
    last_chunk = pl.num_programs(0) - 1
    needs_mask = (seq_len % TT) != 0      # static: last chunk contains padding?

    # Initialize the recurrent carry from the provided initial state.
    @pl.when(chunk == 0)
    def _():
        h_sc[...] = h0_ref[...].astype(jnp.float32)
        c_sc[...] = c0_ref[...].astype(jnp.float32)

    def run_chunk(masked):
        # Carry h/c in registers across the unrolled steps; VMEM scratch is
        # read once here and written once after the loop.
        def step(i, carry):
            h, c = carry                  # (B, H) f32

            # Only the recurrent matmul is on the serial path; x @ Wih^T + bias
            # was precomputed into xg for the whole sequence.
            gates = xg_ref[i].astype(jnp.float32) + jnp.dot(
                h.astype(whh_ref.dtype), whh_ref[...],
                preferred_element_type=jnp.float32)        # (B, 4H) f32

            # Gate layout was permuted to [i, f, o, g] in the wrapper so the
            # three sigmoids fuse into a single EUP call.
            sig = jax.nn.sigmoid(gates[:, 0:3 * H])
            ingate     = sig[:, 0 * H:1 * H]
            forgetgate = sig[:, 1 * H:2 * H]
            outgate    = sig[:, 2 * H:3 * H]
            cellgate   = jnp.tanh(gates[:, 3 * H:4 * H])

            c_new = forgetgate * c + ingate * cellgate
            h_new = outgate * jnp.tanh(c_new)

            if masked:
                # Padded timesteps leave the carry untouched; their ys rows are
                # sliced off in the wrapper.
                valid = (chunk * TT + i) < seq_len
                h_new = jnp.where(valid, h_new, h)
                c_new = jnp.where(valid, c_new, c)

            ys_ref[i] = h_new.astype(ys_ref.dtype)
            return (h_new, c_new)

        h, c = lax.fori_loop(0, TT, step, (h_sc[...], c_sc[...]),
                             unroll=unroll)
        h_sc[...] = h
        c_sc[...] = c

    if needs_mask:
        # Only the final chunk pays the per-step tail mask.
        @pl.when(chunk != last_chunk)
        def _():
            run_chunk(False)

        @pl.when(chunk == last_chunk)
        def _():
            run_chunk(True)
    else:
        run_chunk(False)

    @pl.when(chunk == last_chunk)
    def _():
        hN_ref[...] = h_sc[...].astype(hN_ref.dtype)
        cN_ref[...] = c_sc[...].astype(cN_ref.dtype)


def _vmem_capacity_bytes():
    try:
        return int(pltpu.get_tpu_info().vmem_capacity_bytes)
    except Exception:
        return 64 * 1024 * 1024   # conservative fallback (v7x per-TC VMEM)


def lstm_layer(x, h0, c0, weight_ih, weight_hh, bias, *,
               time_block=None, matmul_dtype=jnp.bfloat16):
    """x: (T, B, I); h0, c0: (B, H); weight_ih: (4H, I); weight_hh: (4H, H);
    bias: (4H,).  Returns (ys (T,B,H), (hN, cN)) — same as the PyTorch module.

    matmul_dtype controls the MXU-operand / xg streaming dtype (accumulation
    and gate math are always f32).  time_block=None derives the time-chunk size
    from the chip's VMEM capacity.
    NOTE: best MXU utilization needs B >= 128 and H a multiple of 128; small
    demo shapes under-fill the systolic array and use masked stores.
    """
    T, B, I = x.shape
    H = h0.shape[-1]
    out_dtype = x.dtype

    w_dt = jnp.dtype(matmul_dtype if matmul_dtype is not None
                     else weight_hh.dtype)

    # Permute gate rows from PyTorch's [i, f, g, o] to [i, f, o, g] so the
    # kernel can apply one sigmoid over the first 3H columns, one tanh over
    # the last H.  (Row permutation of the weights/bias == column permutation
    # of the gates; the recombination in the kernel undoes it, so semantics
    # are unchanged.)
    def reorder(a):
        return jnp.concatenate([a[:2 * H], a[3 * H:4 * H], a[2 * H:3 * H]],
                               axis=0)

    wih_t = jnp.transpose(reorder(weight_ih)).astype(w_dt)     # (I, 4H)
    whh_t = jnp.transpose(reorder(weight_hh)).astype(w_dt)     # (H, 4H)
    b_r = reorder(bias).astype(jnp.float32)                    # (4H,)

    # Hoisted input projection (+ bias) for the whole sequence: one big
    # MXU-efficient matmul outside the serial recurrence.  The result is
    # streamed to the kernel in the matmul dtype (bf16 by default) to halve
    # HBM/DMA traffic; it is cast back to f32 inside the kernel.
    xg = jnp.dot(x.reshape(T * B, I).astype(w_dt), wih_t,
                 preferred_element_type=jnp.float32)
    xg = (xg + b_r).reshape(T, B, 4 * H)
    xg_dt = w_dt if w_dt.itemsize < 4 else jnp.dtype(jnp.float32)
    xg = xg.astype(xg_dt)

    # ---- VMEM budget and time-chunk size ------------------------------------
    vmem_cap = _vmem_capacity_bytes()
    budget = int(0.75 * vmem_cap)          # ~25% headroom for compiler scratch
    xg_item = jnp.dtype(xg_dt).itemsize
    out_item = jnp.dtype(out_dtype).itemsize
    fixed = (whh_t.size * w_dt.itemsize    # resident Whh^T
             + 4 * B * H * 4               # h/c scratch + resident h0/c0
             + 2 * B * H * out_item        # hN/cN
             + (1 << 20))                  # misc slack
    per_step = 2 * B * 4 * H * xg_item + 2 * B * H * out_item  # dbl-buffered slabs
    if time_block is None:
        TT = max(1, (budget - fixed) // max(1, per_step))
        TT = int(min(TT, 64, T))
    else:
        TT = int(max(1, min(time_block, T)))
    unroll = int(min(TT, 8))               # partial unroll; full unroll only if TT<=8

    n_chunks = -(-T // TT)
    T_pad = n_chunks * TT
    if T_pad != T:
        xg = jnp.pad(xg, ((0, T_pad - T), (0, 0), (0, 0)))

    est = fixed + TT * per_step
    vmem_limit = int(min(budget, max(8 * 1024 * 1024, 2 * est)))

    kernel = functools.partial(_lstm_chunk_kernel, hidden_size=H,
                               time_block=TT, seq_len=T, unroll=unroll)

    cost = pl.CostEstimate(
        flops=2 * T * B * H * 4 * H,
        transcendentals=5 * T * B * H,
        bytes_accessed=(T_pad * B * 4 * H * xg_item
                        + T_pad * B * H * out_item
                        + whh_t.size * w_dt.itemsize
                        + 4 * B * H * out_item),
    )

    grid_spec = pltpu.PrefetchScalarGridSpec(
        num_scalar_prefetch=0,
        grid=(n_chunks,),
        in_specs=[
            pl.BlockSpec((TT, B, 4 * H), lambda c: (c, 0, 0)),   # xg chunk (streamed)
            pl.BlockSpec((H, 4 * H), lambda c: (0, 0)),          # Whh^T (resident)
            pl.BlockSpec((B, H), lambda c: (0, 0)),              # h0
            pl.BlockSpec((B, H), lambda c: (0, 0)),              # c0
        ],
        out_specs=[
            pl.BlockSpec((TT, B, H), lambda c: (c, 0, 0)),       # ys chunk
            pl.BlockSpec((B, H), lambda c: (0, 0)),              # hN
            pl.BlockSpec((B, H), lambda c: (0, 0)),              # cN
        ],
        scratch_shapes=[
            pltpu.VMEM((B, H), jnp.float32),                     # h carry
            pltpu.VMEM((B, H), jnp.float32),                     # c carry
        ],
    )

    ys, hN, cN = pl.pallas_call(
        kernel,
        grid_spec=grid_spec,
        out_shape=(
            jax.ShapeDtypeStruct((T_pad, B, H), out_dtype),
            jax.ShapeDtypeStruct((B, H), out_dtype),
            jax.ShapeDtypeStruct((B, H), out_dtype),
        ),
        compiler_params=pltpu.CompilerParams(
            dimension_semantics=("arbitrary",),   # sequential recurrence over T
            vmem_limit_bytes=vmem_limit,
        ),
        cost_estimate=cost,
    )(xg, whh_t, h0, c0)

    if T_pad != T:
        ys = ys[:T]
    return ys, (hN, cN)


def _lstm_layer_ref(x, h0, c0, weight_ih, weight_hh, bias):
    """Pure-JAX reference (mirrors the PyTorch forward) for validation."""
    def step(carry, x_t):
        h, c = carry
        gates = x_t @ weight_ih.T + h @ weight_hh.T + bias
        i, f, g, o = jnp.split(gates, 4, axis=1)
        i = jax.nn.sigmoid(i)
        f = jax.nn.sigmoid(f)
        g = jnp.tanh(g)
        o = jax.nn.sigmoid(o)
        c_new = f * c + i * g
        h_new = o * jnp.tanh(c_new)
        return (h_new, c_new), h_new

    (hN, cN), ys = jax.lax.scan(step, (h0, c0), x)
    return ys, (hN, cN)


if __name__ == "__main__":
    # Small shapes consistent with the module's forward.
    T, B, I, H = 12, 8, 32, 32
    key = jax.random.PRNGKey(0)
    kx, kh, kc, kwi, kwh, kb = jax.random.split(key, 6)

    stdv = 1.0 / math.sqrt(H)
    weight_ih = jax.random.uniform(kwi, (4 * H, I), jnp.float32, -stdv, stdv)
    weight_hh = jax.random.uniform(kwh, (4 * H, H), jnp.float32, -stdv, stdv)
    bias = jax.random.uniform(kb, (4 * H,), jnp.float32, -stdv, stdv)

    x = jax.random.normal(kx, (T, B, I), jnp.float32)
    h0 = jax.random.normal(kh, (B, H), jnp.float32)
    c0 = jax.random.normal(kc, (B, H), jnp.float32)

    ys_ref, (hN_ref, cN_ref) = _lstm_layer_ref(x, h0, c0, weight_ih, weight_hh, bias)

    # 1) f32 path, forced time_block=8: exercises the chunked grid (2 chunks)
    #    and the last-chunk tail-masking path; tight tolerance vs f32 reference.
    ys, (hN, cN) = lstm_layer(x, h0, c0, weight_ih, weight_hh, bias,
                              time_block=8, matmul_dtype=jnp.float32)
    jax.block_until_ready((ys, hN, cN))
    assert jnp.allclose(ys, ys_ref, atol=2e-5, rtol=2e-5)
    assert jnp.allclose(hN, hN_ref, atol=2e-5, rtol=2e-5)
    assert jnp.allclose(cN, cN_ref, atol=2e-5, rtol=2e-5)

    # 2) Default fast path (bf16 MXU operands / bf16 xg stream, VMEM-derived
    #    time block): looser tolerance since h is re-quantized each step.
    ys_b, (hN_b, cN_b) = lstm_layer(x, h0, c0, weight_ih, weight_hh, bias)
    jax.block_until_ready((ys_b, hN_b, cN_b))
    assert jnp.allclose(ys_b, ys_ref, atol=1e-1, rtol=1e-1)
    assert jnp.allclose(hN_b, hN_ref, atol=1e-1, rtol=1e-1)
    assert jnp.allclose(cN_b, cN_ref, atol=1e-1, rtol=1e-1)

    print("KERNEL_OK")
</pallas_src>

<mosaic_0001>
module attributes {stable_mosaic.version = 11 : i64} {
  func.func @_lstm_chunk_kernel(%arg0: i32, %arg1: memref<8x8x128xf32, #tpu.memory_space<vmem>>, %arg2: memref<32x128xf32, #tpu.memory_space<vmem>>, %arg3: memref<8x32xf32, #tpu.memory_space<vmem>>, %arg4: memref<8x32xf32, #tpu.memory_space<vmem>>, %arg5: memref<8x8x32xf32, #tpu.memory_space<vmem>>, %arg6: memref<8x32xf32, #tpu.memory_space<vmem>>, %arg7: memref<8x32xf32, #tpu.memory_space<vmem>>, %arg8: memref<8x32xf32, #tpu.memory_space<vmem>>, %arg9: memref<8x32xf32, #tpu.memory_space<vmem>>) attributes {dimension_semantics = [#tpu.dimension_semantics<arbitrary>], iteration_bounds = array<i64: 2>, scalar_prefetch = 0 : i64, scratch_operands = 2 : i64, tpu.core_type = #tpu.core_type<tc>, window_params = [{transform_indices = @transform_0, window_bounds = array<i64: 8, 8, 128>}, {pipeline_mode = #tpu.pipeline_mode<synchronous>, transform_indices = @transform_1, window_bounds = array<i64: 32, 128>}, {pipeline_mode = #tpu.pipeline_mode<synchronous>, transform_indices = @transform_2, window_bounds = array<i64: 8, 32>}, {pipeline_mode = #tpu.pipeline_mode<synchronous>, transform_indices = @transform_3, window_bounds = array<i64: 8, 32>}, {transform_indices = @transform_4, window_bounds = array<i64: 8, 8, 32>}, {pipeline_mode = #tpu.pipeline_mode<synchronous>, transform_indices = @transform_5, window_bounds = array<i64: 8, 32>}, {pipeline_mode = #tpu.pipeline_mode<synchronous>, transform_indices = @transform_6, window_bounds = array<i64: 8, 32>}]} {
    %c0_i32 = arith.constant 0 : i32
    %0 = arith.cmpi eq, %arg0, %c0_i32 : i32
    %1 = arith.extui %0 : i1 to i32
    %c0_i32_0 = arith.constant 0 : i32
    %2 = arith.cmpi ne, %1, %c0_i32_0 : i32
    scf.if %2 {
      %c0 = arith.constant 0 : index
      %c0_6 = arith.constant 0 : index
      %12 = vector.load %arg3[%c0, %c0_6] : memref<8x32xf32, #tpu.memory_space<vmem>>, vector<8x32xf32>
      %c0_7 = arith.constant 0 : index
      %c0_8 = arith.constant 0 : index
      %13 = vector.load %arg8[%c0_7, %c0_8] : memref<8x32xf32, #tpu.memory_space<vmem>>, vector<8x32xf32>
      tpu.vector_store %arg8[%c0_7, %c0_8], %12 {strides = array<i32>} : memref<8x32xf32, #tpu.memory_space<vmem>>, vector<8x32xf32>,
      %c0_9 = arith.constant 0 : index
      %c0_10 = arith.constant 0 : index
      %14 = vector.load %arg4[%c0_9, %c0_10] : memref<8x32xf32, #tpu.memory_space<vmem>>, vector<8x32xf32>
      %c0_11 = arith.constant 0 : index
      %c0_12 = arith.constant 0 : index
      %15 = vector.load %arg9[%c0_11, %c0_12] : memref<8x32xf32, #tpu.memory_space<vmem>>, vector<8x32xf32>
      tpu.vector_store %arg9[%c0_11, %c0_12], %14 {strides = array<i32>} : memref<8x32xf32, #tpu.memory_space<vmem>>, vector<8x32xf32>,
    } else {
    }
    %c1_i32 = arith.constant 1 : i32
    %3 = arith.cmpi ne, %arg0, %c1_i32 : i32
    %4 = arith.extui %3 : i1 to i32
    %c0_i32_1 = arith.constant 0 : i32
    %5 = arith.cmpi ne, %4, %c0_i32_1 : i32
    scf.if %5 {
      %c0 = arith.constant 0 : index
      %c0_6 = arith.constant 0 : index
      %12 = vector.load %arg8[%c0, %c0_6] : memref<8x32xf32, #tpu.memory_space<vmem>>, vector<8x32xf32>
      %c0_7 = arith.constant 0 : index
      %c0_8 = arith.constant 0 : index
      %13 = vector.load %arg9[%c0_7, %c0_8] : memref<8x32xf32, #tpu.memory_space<vmem>>, vector<8x32xf32>
      %c0_i32_9 = arith.constant 0 : i32
      %14 = arith.index_cast %c0_i32_9 : i32 to index
      %c0_10 = arith.constant 0 : index
      %c0_11 = arith.constant 0 : index
      %15 = vector.load %arg1[%14, %c0_10, %c0_11] : memref<8x8x128xf32, #tpu.memory_space<vmem>>, vector<1x8x128xf32>
      %16 = vector.shape_cast %15 : vector<1x8x128xf32> to vector<8x128xf32>
      %c0_12 = arith.constant 0 : index
      %c0_13 = arith.constant 0 : index
      %17 = vector.load %arg2[%c0_12, %c0_13] : memref<32x128xf32, #tpu.memory_space<vmem>>, vector<32x128xf32>
      %cst = arith.constant dense<0.000000e+00> : vector<8x128xf32>
      %18 = tpu.matmul %12, %17, %cst {dimension_numbers = #tpu.dot_dimension_numbers<[1], [0], [0], [1], [0, 0, 1, 1], [], []>} : vector<8x32xf32>, vector<32x128xf32>, vector<8x128xf32> -> vector<8x128xf32>
      %19 = arith.addf %16, %18 : vector<8x128xf32>
      %20 = vector.extract_strided_slice %19 {offsets = [0, 0], sizes = [8, 96], strides = [1, 1]} : vector<8x128xf32> to vector<8x96xf32>
      %21 = arith.negf %20 : vector<8x96xf32>
      %22 = math.exp %21 : vector<8x96xf32>
      %cst_14 = arith.constant 1.000000e+00 : f32
      %23 = vector.broadcast %cst_14 : f32 to vector<8x96xf32>
      %24 = arith.addf %23, %22 : vector<8x96xf32>
      %25 = arith.divf %23, %24 : vector<8x96xf32>
      %26 = vector.extract_strided_slice %25 {offsets = [0, 0], sizes = [8, 32], strides = [1, 1]} : vector<8x96xf32> to vector<8x32xf32>
      %27 = vector.extract_strided_slice %25 {offsets = [0, 32], sizes = [8, 32], strides = [1, 1]} : vector<8x96xf32> to vector<8x32xf32>
      %28 = vector.extract_strided_slice %25 {offsets = [0, 64], sizes = [8, 32], strides = [1, 1]} : vector<8x96xf32> to vector<8x32xf32>
      %29 = vector.extract_strided_slice %19 {offsets = [0, 96], sizes = [8, 32], strides = [1, 1]} : vector<8x128xf32> to vector<8x32xf32>
      %30 = math.tanh %29 : vector<8x32xf32>
      %31 = arith.mulf %27, %13 : vector<8x32xf32>
      %32 = arith.mulf %26, %30 : vector<8x32xf32>
      %33 = arith.addf %31, %32 : vector<8x32xf32>
      %34 = math.tanh %33 : vector<8x32xf32>
      %35 = arith.mulf %28, %34 : vector<8x32xf32>
      %36 = arith.index_cast %c0_i32_9 : i32 to index
      %c0_15 = arith.constant 0 : index
      %c0_16 = arith.constant 0 : index
      %37 = vector.load %arg5[%36, %c0_15, %c0_16] : memref<8x8x32xf32, #tpu.memory_space<vmem>>, vector<1x8x32xf32>
      %38 = vector.shape_cast %37 : vector<1x8x32xf32> to vector<8x32xf32>
      %39 = vector.shape_cast %35 : vector<8x32xf32> to vector<1x8x32xf32>
      tpu.vector_store %arg5[%36, %c0_15, %c0_16], %39 {strides = array<i32>} : memref<8x8x32xf32, #tpu.memory_space<vmem>>, vector<1x8x32xf32>,
      %c1_i32_17 = arith.constant 1 : i32
      %40 = arith.index_cast %c1_i32_17 : i32 to index
      %c0_18 = arith.constant 0 : index
      %c0_19 = arith.constant 0 : index
      %41 = vector.load %arg1[%40, %c0_18, %c0_19] : memref<8x8x128xf32, #tpu.memory_space<vmem>>, vector<1x8x128xf32>
      %42 = vector.shape_cast %41 : vector<1x8x128xf32> to vector<8x128xf32>
      %c0_20 = arith.constant 0 : index
      %c0_21 = arith.constant 0 : index
      %43 = vector.load %arg2[%c0_20, %c0_21] : memref<32x128xf32, #tpu.memory_space<vmem>>, vector<32x128xf32>
      %cst_22 = arith.constant dense<0.000000e+00> : vector<8x128xf32>
      %44 = tpu.matmul %35, %43, %cst_22 {dimension_numbers = #tpu.dot_dimension_numbers<[1], [0], [0], [1], [0, 0, 1, 1], [], []>} : vector<8x32xf32>, vector<32x128xf32>, vector<8x128xf32> -> vector<8x128xf32>
      %45 = arith.addf %42, %44 : vector<8x128xf32>
      %46 = vector.extract_strided_slice %45 {offsets = [0, 0], sizes = [8, 96], strides = [1, 1]} : vector<8x128xf32> to vector<8x96xf32>
      %47 = arith.negf %46 : vector<8x96xf32>
      %48 = math.exp %47 : vector<8x96xf32>
      %cst_23 = arith.constant 1.000000e+00 : f32
      %49 = vector.broadcast %cst_23 : f32 to vector<8x96xf32>
      %50 = arith.addf %49, %48 : vector<8x96xf32>
      %51 = arith.divf %49, %50 : vector<8x96xf32>
      %52 = vector.extract_strided_slice %51 {offsets = [0, 0], sizes = [8, 32], strides = [1, 1]} : vector<8x96xf32> to vector<8x32xf32>
      %53 = vector.extract_strided_slice %51 {offsets = [0, 32], sizes = [8, 32], strides = [1, 1]} : vector<8x96xf32> to vector<8x32xf32>
      %54 = vector.extract_strided_slice %51 {offsets = [0, 64], sizes = [8, 32], strides = [1, 1]} : vector<8x96xf32> to vector<8x32xf32>
      %55 = vector.extract_strided_slice %45 {offsets = [0, 96], sizes = [8, 32], strides = [1, 1]} : vector<8x128xf32> to vector<8x32xf32>
      %56 = math.tanh %55 : vector<8x32xf32>
      %57 = arith.mulf %53, %33 : vector<8x32xf32>
      %58 = arith.mulf %52, %56 : vector<8x32xf32>
      %59 = arith.addf %57, %58 : vector<8x32xf32>
      %60 = math.tanh %59 : vector<8x32xf32>
      %61 = arith.mulf %54, %60 : vector<8x32xf32>
      %62 = arith.index_cast %c1_i32_17 : i32 to index
      %c0_24 = arith.constant 0 : index
      %c0_25 = arith.constant 0 : index
      %63 = vector.load %arg5[%62, %c0_24, %c0_25] : memref<8x8x32xf32, #tpu.memory_space<vmem>>, vector<1x8x32xf32>
      %64 = vector.shape_cast %63 : vector<1x8x32xf32> to vector<8x32xf32>
      %65 = vector.shape_cast %61 : vector<8x32xf32> to vector<1x8x32xf32>
      tpu.vector_store %arg5[%62, %c0_24, %c0_25], %65 {strides = array<i32>} : memref<8x8x32xf32, #tpu.memory_space<vmem>>, vector<1x8x32xf32>,
      %c2_i32 = arith.constant 2 : i32
      %66 = arith.index_cast %c2_i32 : i32 to index
      %c0_26 = arith.constant 0 : index
      %c0_27 = arith.constant 0 : index
      %67 = vector.load %arg1[%66, %c0_26, %c0_27] : memref<8x8x128xf32, #tpu.memory_space<vmem>>, vector<1x8x128xf32>
      %68 = vector.shape_cast %67 : vector<1x8x128xf32> to vector<8x128xf32>
      %c0_28 = arith.constant 0 : index
      %c0_29 = arith.constant 0 : index
      %69 = vector.load %arg2[%c0_28, %c0_29] : memref<32x128xf32, #tpu.memory_space<vmem>>, vector<32x128xf32>
      %cst_30 = arith.constant dense<0.000000e+00> : vector<8x128xf32>
      %70 = tpu.matmul %61, %69, %cst_30 {dimension_numbers = #tpu.dot_dimension_numbers<[1], [0], [0], [1], [0, 0, 1, 1], [], []>} : vector<8x32xf32>, vector<32x128xf32>, vector<8x128xf32> -> vector<8x128xf32>
      %71 = arith.addf %68, %70 : vector<8x128xf32>
      %72 = vector.extract_strided_slice %71 {offsets = [0, 0], sizes = [8, 96], strides = [1, 1]} : vector<8x128xf32> to vector<8x96xf32>
      %73 = arith.negf %72 : vector<8x96xf32>
      %74 = math.exp %73 : vector<8x96xf32>
      %cst_31 = arith.constant 1.000000e+00 : f32
      %75 = vector.broadcast %cst_31 : f32 to vector<8x96xf32>
      %76 = arith.addf %75, %74 : vector<8x96xf32>
      %77 = arith.divf %75, %76 : vector<8x96xf32>
      %78 = vector.extract_strided_slice %77 {offsets = [0, 0], sizes = [8, 32], strides = [1, 1]} : vector<8x96xf32> to vector<8x32xf32>
      %79 = vector.extract_strided_slice %77 {offsets = [0, 32], sizes = [8, 32], strides = [1, 1]} : vector<8x96xf32> to vector<8x32xf32>
      %80 = vector.extract_strided_slice %77 {offsets = [0, 64], sizes = [8, 32], strides = [1, 1]} : vector<8x96xf32> to vector<8x32xf32>
      %81 = vector.extract_strided_slice %71 {offsets = [0, 96], sizes = [8, 32], strides = [1, 1]} : vector<8x128xf32> to vector<8x32xf32>
      %82 = math.tanh %81 : vector<8x32xf32>
      %83 = arith.mulf %79, %59 : vector<8x32xf32>
      %84 = arith.mulf %78, %82 : vector<8x32xf32>
      %85 = arith.addf %83, %84 : vector<8x32xf32>
      %86 = math.tanh %85 : vector<8x32xf32>
      %87 = arith.mulf %80, %86 : vector<8x32xf32>
      %88 = arith.index_cast %c2_i32 : i32 to index
      %c0_32 = arith.constant 0 : index
      %c0_33 = arith.constant 0 : index
      %89 = vector.load %arg5[%88, %c0_32, %c0_33] : memref<8x8x32xf32, #tpu.memory_space<vmem>>, vector<1x8x32xf32>
      %90 = vector.shape_cast %89 : vector<1x8x32xf32> to vector<8x32xf32>
      %91 = vector.shape_cast %87 : vector<8x32xf32> to vector<1x8x32xf32>
      tpu.vector_store %arg5[%88, %c0_32, %c0_33], %91 {strides = array<i32>} : memref<8x8x32xf32, #tpu.memory_space<vmem>>, vector<1x8x32xf32>,
      %c3_i32 = arith.constant 3 : i32
      %92 = arith.index_cast %c3_i32 : i32 to index
      %c0_34 = arith.constant 0 : index
      %c0_35 = arith.constant 0 : index
      %93 = vector.load %arg1[%92, %c0_34, %c0_35] : memref<8x8x128xf32, #tpu.memory_space<vmem>>, vector<1x8x128xf32>
      %94 = vector.shape_cast %93 : vector<1x8x128xf32> to vector<8x128xf32>
      %c0_36 = arith.constant 0 : index
      %c0_37 = arith.constant 0 : index
      %95 = vector.load %arg2[%c0_36, %c0_37] : memref<32x128xf32, #tpu.memory_space<vmem>>, vector<32x128xf32>
      %cst_38 = arith.constant dense<0.000000e+00> : vector<8x128xf32>
      %96 = tpu.matmul %87, %95, %cst_38 {dimension_numbers = #tpu.dot_dimension_numbers<[1], [0], [0], [1], [0, 0, 1, 1], [], []>} : vector<8x32xf32>, vector<32x128xf32>, vector<8x128xf32> -> vector<8x128xf32>
      %97 = arith.addf %94, %96 : vector<8x128xf32>
      %98 = vector.extract_strided_slice %97 {offsets = [0, 0], sizes = [8, 96], strides = [1, 1]} : vector<8x128xf32> to vector<8x96xf32>
      %99 = arith.negf %98 : vector<8x96xf32>
      %100 = math.exp %99 : vector<8x96xf32>
      %cst_39 = arith.constant 1.000000e+00 : f32
      %101 = vector.broadcast %cst_39 : f32 to vector<8x96xf32>
      %102 = arith.addf %101, %100 : vector<8x96xf32>
      %103 = arith.divf %101, %102 : vector<8x96xf32>
      %104 = vector.extract_strided_slice %103 {offsets = [0, 0], sizes = [8, 32], strides = [1, 1]} : vector<8x96xf32> to vector<8x32xf32>
      %105 = vector.extract_strided_slice %103 {offsets = [0, 32], sizes = [8, 32], strides = [1, 1]} : vector<8x96xf32> to vector<8x32xf32>
      %106 = vector.extract_strided_slice %103 {offsets = [0, 64], sizes = [8, 32], strides = [1, 1]} : vector<8x96xf32> to vector<8x32xf32>
      %107 = vector.extract_strided_slice %97 {offsets = [0, 96], sizes = [8, 32], strides = [1, 1]} : vector<8x128xf32> to vector<8x32xf32>
      %108 = math.tanh %107 : vector<8x32xf32>
      %109 = arith.mulf %105, %85 : vector<8x32xf32>
      %110 = arith.mulf %104, %108 : vector<8x32xf32>
      %111 = arith.addf %109, %110 : vector<8x32xf32>
      %112 = math.tanh %111 : vector<8x32xf32>
      %113 = arith.mulf %106, %112 : vector<8x32xf32>
      %114 = arith.index_cast %c3_i32 : i32 to index
      %c0_40 = arith.constant 0 : index
      %c0_41 = arith.constant 0 : index
      %115 = vector.load %arg5[%114, %c0_40, %c0_41] : memref<8x8x32xf32, #tpu.memory_space<vmem>>, vector<1x8x32xf32>
      %116 = vector.shape_cast %115 : vector<1x8x32xf32> to vector<8x32xf32>
      %117 = vector.shape_cast %113 : vector<8x32xf32> to vector<1x8x32xf32>
      tpu.vector_store %arg5[%114, %c0_40, %c0_41], %117 {strides = array<i32>} : memref<8x8x32xf32, #tpu.memory_space<vmem>>, vector<1x8x32xf32>,
      %c4_i32 = arith.constant 4 : i32
      %118 = arith.index_cast %c4_i32 : i32 to index
      %c0_42 = arith.constant 0 : index
      %c0_43 = arith.constant 0 : index
      %119 = vector.load %arg1[%118, %c0_42, %c0_43] : memref<8x8x128xf32, #tpu.memory_space<vmem>>, vector<1x8x128xf32>
      %120 = vector.shape_cast %119 : vector<1x8x128xf32> to vector<8x128xf32>
      %c0_44 = arith.constant 0 : index
      %c0_45 = arith.constant 0 : index
      %121 = vector.load %arg2[%c0_44, %c0_45] : memref<32x128xf32, #tpu.memory_space<vmem>>, vector<32x128xf32>
      %cst_46 = arith.constant dense<0.000000e+00> : vector<8x128xf32>
      %122 = tpu.matmul %113, %121, %cst_46 {dimension_numbers = #tpu.dot_dimension_numbers<[1], [0], [0], [1], [0, 0, 1, 1], [], []>} : vector<8x32xf32>, vector<32x128xf32>, vector<8x128xf32> -> vector<8x128xf32>
      %123 = arith.addf %120, %122 : vector<8x128xf32>
      %124 = vector.extract_strided_slice %123 {offsets = [0, 0], sizes = [8, 96], strides = [1, 1]} : vector<8x128xf32> to vector<8x96xf32>
      %125 = arith.negf %124 : vector<8x96xf32>
      %126 = math.exp %125 : vector<8x96xf32>
      %cst_47 = arith.constant 1.000000e+00 : f32
      %127 = vector.broadcast %cst_47 : f32 to vector<8x96xf32>
      %128 = arith.addf %127, %126 : vector<8x96xf32>
      %129 = arith.divf %127, %128 : vector<8x96xf32>
      %130 = vector.extract_strided_slice %129 {offsets = [0, 0], sizes = [8, 32], strides = [1, 1]} : vector<8x96xf32> to vector<8x32xf32>
      %131 = vector.extract_strided_slice %129 {offsets = [0, 32], sizes = [8, 32], strides = [1, 1]} : vector<8x96xf32> to vector<8x32xf32>
      %132 = vector.extract_strided_slice %129 {offsets = [0, 64], sizes = [8, 32], strides = [1, 1]} : vector<8x96xf32> to vector<8x32xf32>
      %133 = vector.extract_strided_slice %123 {offsets = [0, 96], sizes = [8, 32], strides = [1, 1]} : vector<8x128xf32> to vector<8x32xf32>
      %134 = math.tanh %133 : vector<8x32xf32>
      %135 = arith.mulf %131, %111 : vector<8x32xf32>
      %136 = arith.mulf %130, %134 : vector<8x32xf32>
      %137 = arith.addf %135, %136 : vector<8x32xf32>
      %138 = math.tanh %137 : vector<8x32xf32>
      %139 = arith.mulf %132, %138 : vector<8x32xf32>
      %140 = arith.index_cast %c4_i32 : i32 to index
      %c0_48 = arith.constant 0 : index
      %c0_49 = arith.constant 0 : index
      %141 = vector.load %arg5[%140, %c0_48, %c0_49] : memref<8x8x32xf32, #tpu.memory_space<vmem>>, vector<1x8x32xf32>
      %142 = vector.shape_cast %141 : vector<1x8x32xf32> to vector<8x32xf32>
      %143 = vector.shape_cast %139 : vector<8x32xf32> to vector<1x8x32xf32>
      tpu.vector_store %arg5[%140, %c0_48, %c0_49], %143 {strides = array<i32>} : memref<8x8x32xf32, #tpu.memory_space<vmem>>, vector<1x8x32xf32>,
      %c5_i32 = arith.constant 5 : i32
      %144 = arith.index_cast %c5_i32 : i32 to index
      %c0_50 = arith.constant 0 : index
      %c0_51 = arith.constant 0 : index
      %145 = vector.load %arg1[%144, %c0_50, %c0_51] : memref<8x8x128xf32, #tpu.memory_space<vmem>>, vector<1x8x128xf32>
      %146 = vector.shape_cast %145 : vector<1x8x128xf32> to vector<8x128xf32>
      %c0_52 = arith.constant 0 : index
      %c0_53 = arith.constant 0 : index
      %147 = vector.load %arg2[%c0_52, %c0_53] : memref<32x128xf32, #tpu.memory_space<vmem>>, vector<32x128xf32>
      %cst_54 = arith.constant dense<0.000000e+00> : vector<8x128xf32>
      %148 = tpu.matmul %139, %147, %cst_54 {dimension_numbers = #tpu.dot_dimension_numbers<[1], [0], [0], [1], [0, 0, 1, 1], [], []>} : vector<8x32xf32>, vector<32x128xf32>, vector<8x128xf32> -> vector<8x128xf32>
      %149 = arith.addf %146, %148 : vector<8x128xf32>
      %150 = vector.extract_strided_slice %149 {offsets = [0, 0], sizes = [8, 96], strides = [1, 1]} : vector<8x128xf32> to vector<8x96xf32>
      %151 = arith.negf %150 : vector<8x96xf32>
      %152 = math.exp %151 : vector<8x96xf32>
      %cst_55 = arith.constant 1.000000e+00 : f32
      %153 = vector.broadcast %cst_55 : f32 to vector<8x96xf32>
      %154 = arith.addf %153, %152 : vector<8x96xf32>
      %155 = arith.divf %153, %154 : vector<8x96xf32>
      %156 = vector.extract_strided_slice %155 {offsets = [0, 0], sizes = [8, 32], strides = [1, 1]} : vector<8x96xf32> to vector<8x32xf32>
      %157 = vector.extract_strided_slice %155 {offsets = [0, 32], sizes = [8, 32], strides = [1, 1]} : vector<8x96xf32> to vector<8x32xf32>
      %158 = vector.extract_strided_slice %155 {offsets = [0, 64], sizes = [8, 32], strides = [1, 1]} : vector<8x96xf32> to vector<8x32xf32>
      %159 = vector.extract_strided_slice %149 {offsets = [0, 96], sizes = [8, 32], strides = [1, 1]} : vector<8x128xf32> to vector<8x32xf32>
      %160 = math.tanh %159 : vector<8x32xf32>
      %161 = arith.mulf %157, %137 : vector<8x32xf32>
      %162 = arith.mulf %156, %160 : vector<8x32xf32>
      %163 = arith.addf %161, %162 : vector<8x32xf32>
      %164 = math.tanh %163 : vector<8x32xf32>
      %165 = arith.mulf %158, %164 : vector<8x32xf32>
      %166 = arith.index_cast %c5_i32 : i32 to index
      %c0_56 = arith.constant 0 : index
      %c0_57 = arith.constant 0 : index
      %167 = vector.load %arg5[%166, %c0_56, %c0_57] : memref<8x8x32xf32, #tpu.memory_space<vmem>>, vector<1x8x32xf32>
      %168 = vector.shape_cast %167 : vector<1x8x32xf32> to vector<8x32xf32>
      %169 = vector.shape_cast %165 : vector<8x32xf32> to vector<1x8x32xf32>
      tpu.vector_store %arg5[%166, %c0_56, %c0_57], %169 {strides = array<i32>} : memref<8x8x32xf32, #tpu.memory_space<vmem>>, vector<1x8x32xf32>,
      %c6_i32 = arith.constant 6 : i32
      %170 = arith.index_cast %c6_i32 : i32 to index
      %c0_58 = arith.constant 0 : index
      %c0_59 = arith.constant 0 : index
      %171 = vector.load %arg1[%170, %c0_58, %c0_59] : memref<8x8x128xf32, #tpu.memory_space<vmem>>, vector<1x8x128xf32>
      %172 = vector.shape_cast %171 : vector<1x8x128xf32> to vector<8x128xf32>
      %c0_60 = arith.constant 0 : index
      %c0_61 = arith.constant 0 : index
      %173 = vector.load %arg2[%c0_60, %c0_61] : memref<32x128xf32, #tpu.memory_space<vmem>>, vector<32x128xf32>
      %cst_62 = arith.constant dense<0.000000e+00> : vector<8x128xf32>
      %174 = tpu.matmul %165, %173, %cst_62 {dimension_numbers = #tpu.dot_dimension_numbers<[1], [0], [0], [1], [0, 0, 1, 1], [], []>} : vector<8x32xf32>, vector<32x128xf32>, vector<8x128xf32> -> vector<8x128xf32>
      %175 = arith.addf %172, %174 : vector<8x128xf32>
      %176 = vector.extract_strided_slice %175 {offsets = [0, 0], sizes = [8, 96], strides = [1, 1]} : vector<8x128xf32> to vector<8x96xf32>
      %177 = arith.negf %176 : vector<8x96xf32>
      %178 = math.exp %177 : vector<8x96xf32>
      %cst_63 = arith.constant 1.000000e+00 : f32
      %179 = vector.broadcast %cst_63 : f32 to vector<8x96xf32>
      %180 = arith.addf %179, %178 : vector<8x96xf32>
      %181 = arith.divf %179, %180 : vector<8x96xf32>
      %182 = vector.extract_strided_slice %181 {offsets = [0, 0], sizes = [8, 32], strides = [1, 1]} : vector<8x96xf32> to vector<8x32xf32>
      %183 = vector.extract_strided_slice %181 {offsets = [0, 32], sizes = [8, 32], strides = [1, 1]} : vector<8x96xf32> to vector<8x32xf32>
      %184 = vector.extract_strided_slice %181 {offsets = [0, 64], sizes = [8, 32], strides = [1, 1]} : vector<8x96xf32> to vector<8x32xf32>
      %185 = vector.extract_strided_slice %175 {offsets = [0, 96], sizes = [8, 32], strides = [1, 1]} : vector<8x128xf32> to vector<8x32xf32>
      %186 = math.tanh %185 : vector<8x32xf32>
      %187 = arith.mulf %183, %163 : vector<8x32xf32>
      %188 = arith.mulf %182, %186 : vector<8x32xf32>
      %189 = arith.addf %187, %188 : vector<8x32xf32>
      %190 = math.tanh %189 : vector<8x32xf32>
      %191 = arith.mulf %184, %190 : vector<8x32xf32>
      %192 = arith.index_cast %c6_i32 : i32 to index
      %c0_64 = arith.constant 0 : index
      %c0_65 = arith.constant 0 : index
      %193 = vector.load %arg5[%192, %c0_64, %c0_65] : memref<8x8x32xf32, #tpu.memory_space<vmem>>, vector<1x8x32xf32>
      %194 = vector.shape_cast %193 : vector<1x8x32xf32> to vector<8x32xf32>
      %195 = vector.shape_cast %191 : vector<8x32xf32> to vector<1x8x32xf32>
      tpu.vector_store %arg5[%192, %c0_64, %c0_65], %195 {strides = array<i32>} : memref<8x8x32xf32, #tpu.memory_space<vmem>>, vector<1x8x32xf32>,
      %c7_i32 = arith.constant 7 : i32
      %196 = arith.index_cast %c7_i32 : i32 to index
      %c0_66 = arith.constant 0 : index
      %c0_67 = arith.constant 0 : index
      %197 = vector.load %arg1[%196, %c0_66, %c0_67] : memref<8x8x128xf32, #tpu.memory_space<vmem>>, vector<1x8x128xf32>
      %198 = vector.shape_cast %197 : vector<1x8x128xf32> to vector<8x128xf32>
      %c0_68 = arith.constant 0 : index
      %c0_69 = arith.constant 0 : index
      %199 = vector.load %arg2[%c0_68, %c0_69] : memref<32x128xf32, #tpu.memory_space<vmem>>, vector<32x128xf32>
      %cst_70 = arith.constant dense<0.000000e+00> : vector<8x128xf32>
      %200 = tpu.matmul %191, %199, %cst_70 {dimension_numbers = #tpu.dot_dimension_numbers<[1], [0], [0], [1], [0, 0, 1, 1], [], []>} : vector<8x32xf32>, vector<32x128xf32>, vector<8x128xf32> -> vector<8x128xf32>
      %201 = arith.addf %198, %200 : vector<8x128xf32>
      %202 = vector.extract_strided_slice %201 {offsets = [0, 0], sizes = [8, 96], strides = [1, 1]} : vector<8x128xf32> to vector<8x96xf32>
      %203 = arith.negf %202 : vector<8x96xf32>
      %204 = math.exp %203 : vector<8x96xf32>
      %cst_71 = arith.constant 1.000000e+00 : f32
      %205 = vector.broadcast %cst_71 : f32 to vector<8x96xf32>
      %206 = arith.addf %205, %204 : vector<8x96xf32>
      %207 = arith.divf %205, %206 : vector<8x96xf32>
      %208 = vector.extract_strided_slice %207 {offsets = [0, 0], sizes = [8, 32], strides = [1, 1]} : vector<8x96xf32> to vector<8x32xf32>
      %209 = vector.extract_strided_slice %207 {offsets = [0, 32], sizes = [8, 32], strides = [1, 1]} : vector<8x96xf32> to vector<8x32xf32>
      %210 = vector.extract_strided_slice %207 {offsets = [0, 64], sizes = [8, 32], strides = [1, 1]} : vector<8x96xf32> to vector<8x32xf32>
      %211 = vector.extract_strided_slice %201 {offsets = [0, 96], sizes = [8, 32], strides = [1, 1]} : vector<8x128xf32> to vector<8x32xf32>
      %212 = math.tanh %211 : vector<8x32xf32>
      %213 = arith.mulf %209, %189 : vector<8x32xf32>
      %214 = arith.mulf %208, %212 : vector<8x32xf32>
      %215 = arith.addf %213, %214 : vector<8x32xf32>
      %216 = math.tanh %215 : vector<8x32xf32>
      %217 = arith.mulf %210, %216 : vector<8x32xf32>
      %218 = arith.index_cast %c7_i32 : i32 to index
      %c0_72 = arith.constant 0 : index
      %c0_73 = arith.constant 0 : index
      %219 = vector.load %arg5[%218, %c0_72, %c0_73] : memref<8x8x32xf32, #tpu.memory_space<vmem>>, vector<1x8x32xf32>
      %220 = vector.shape_cast %219 : vector<1x8x32xf32> to vector<8x32xf32>
      %221 = vector.shape_cast %217 : vector<8x32xf32> to vector<1x8x32xf32>
      tpu.vector_store %arg5[%218, %c0_72, %c0_73], %221 {strides = array<i32>} : memref<8x8x32xf32, #tpu.memory_space<vmem>>, vector<1x8x32xf32>,
      %c8_i32 = arith.constant 8 : i32
      %c0_74 = arith.constant 0 : index
      %c0_75 = arith.constant 0 : index
      %222 = vector.load %arg8[%c0_74, %c0_75] : memref<8x32xf32, #tpu.memory_space<vmem>>, vector<8x32xf32>
      tpu.vector_store %arg8[%c0_74, %c0_75], %217 {strides = array<i32>} : memref<8x32xf32, #tpu.memory_space<vmem>>, vector<8x32xf32>,
      %c0_76 = arith.constant 0 : index
      %c0_77 = arith.constant 0 : index
      %223 = vector.load %arg9[%c0_76, %c0_77] : memref<8x32xf32, #tpu.memory_space<vmem>>, vector<8x32xf32>
      tpu.vector_store %arg9[%c0_76, %c0_77], %215 {strides = array<i32>} : memref<8x32xf32, #tpu.memory_space<vmem>>, vector<8x32xf32>,
    } else {
    }
    %c1_i32_2 = arith.constant 1 : i32
    %6 = arith.cmpi eq, %arg0, %c1_i32_2 : i32
    %7 = arith.extui %6 : i1 to i32
    %c0_i32_3 = arith.constant 0 : i32
    %8 = arith.cmpi ne, %7, %c0_i32_3 : i32
    scf.if %8 {
      %c0 = arith.constant 0 : index
      %c0_6 = arith.constant 0 : index
      %12 = vector.load %arg8[%c0, %c0_6] : memref<8x32xf32, #tpu.memory_space<vmem>>, vector<8x32xf32>
      %c0_7 = arith.constant 0 : index
      %c0_8 = arith.constant 0 : index
      %13 = vector.load %arg9[%c0_7, %c0_8] : memref<8x32xf32, #tpu.memory_space<vmem>>, vector<8x32xf32>
      %c0_i32_9 = arith.constant 0 : i32
      %14 = arith.index_cast %c0_i32_9 : i32 to index
      %c0_10 = arith.constant 0 : index
      %c0_11 = arith.constant 0 : index
      %15 = vector.load %arg1[%14, %c0_10, %c0_11] : memref<8x8x128xf32, #tpu.memory_space<vmem>>, vector<1x8x128xf32>
      %16 = vector.shape_cast %15 : vector<1x8x128xf32> to vector<8x128xf32>
      %c0_12 = arith.constant 0 : index
      %c0_13 = arith.constant 0 : index
      %17 = vector.load %arg2[%c0_12, %c0_13] : memref<32x128xf32, #tpu.memory_space<vmem>>, vector<32x128xf32>
      %cst = arith.constant dense<0.000000e+00> : vector<8x128xf32>
      %18 = tpu.matmul %12, %17, %cst {dimension_numbers = #tpu.dot_dimension_numbers<[1], [0], [0], [1], [0, 0, 1, 1], [], []>} : vector<8x32xf32>, vector<32x128xf32>, vector<8x128xf32> -> vector<8x128xf32>
      %19 = arith.addf %16, %18 : vector<8x128xf32>
      %20 = vector.extract_strided_slice %19 {offsets = [0, 0], sizes = [8, 96], strides = [1, 1]} : vector<8x128xf32> to vector<8x96xf32>
      %21 = arith.negf %20 : vector<8x96xf32>
      %22 = math.exp %21 : vector<8x96xf32>
      %cst_14 = arith.constant 1.000000e+00 : f32
      %23 = vector.broadcast %cst_14 : f32 to vector<8x96xf32>
      %24 = arith.addf %23, %22 : vector<8x96xf32>
      %25 = arith.divf %23, %24 : vector<8x96xf32>
      %26 = vector.extract_strided_slice %25 {offsets = [0, 0], sizes = [8, 32], strides = [1, 1]} : vector<8x96xf32> to vector<8x32xf32>
      %27 = vector.extract_strided_slice %25 {offsets = [0, 32], sizes = [8, 32], strides = [1, 1]} : vector<8x96xf32> to vector<8x32xf32>
      %28 = vector.extract_strided_slice %25 {offsets = [0, 64], sizes = [8, 32], strides = [1, 1]} : vector<8x96xf32> to vector<8x32xf32>
      %29 = vector.extract_strided_slice %19 {offsets = [0, 96], sizes = [8, 32], strides = [1, 1]} : vector<8x128xf32> to vector<8x32xf32>
      %30 = math.tanh %29 : vector<8x32xf32>
      %31 = arith.mulf %27, %13 : vector<8x32xf32>
      %32 = arith.mulf %26, %30 : vector<8x32xf32>
      %33 = arith.addf %31, %32 : vector<8x32xf32>
      %34 = math.tanh %33 : vector<8x32xf32>
      %35 = arith.mulf %28, %34 : vector<8x32xf32>
      %c8_i32 = arith.constant 8 : i32
      %36 = arith.muli %arg0, %c8_i32 : i32
      %37 = arith.addi %36, %c0_i32_9 : i32
      %c12_i32 = arith.constant 12 : i32
      %38 = arith.cmpi slt, %37, %c12_i32 : i32
      %39 = arith.select %38, %35, %12 : vector<8x32xf32>
      %40 = arith.select %38, %33, %13 : vector<8x32xf32>
      %41 = arith.index_cast %c0_i32_9 : i32 to index
      %c0_15 = arith.constant 0 : index
      %c0_16 = arith.constant 0 : index
      %42 = vector.load %arg5[%41, %c0_15, %c0_16] : memref<8x8x32xf32, #tpu.memory_space<vmem>>, vector<1x8x32xf32>
      %43 = vector.shape_cast %42 : vector<1x8x32xf32> to vector<8x32xf32>
      %44 = vector.shape_cast %39 : vector<8x32xf32> to vector<1x8x32xf32>
      tpu.vector_store %arg5[%41, %c0_15, %c0_16], %44 {strides = array<i32>} : memref<8x8x32xf32, #tpu.memory_space<vmem>>, vector<1x8x32xf32>,
      %c1_i32_17 = arith.constant 1 : i32
      %45 = arith.index_cast %c1_i32_17 : i32 to index
      %c0_18 = arith.constant 0 : index
      %c0_19 = arith.constant 0 : index
      %46 = vector.load %arg1[%45, %c0_18, %c0_19] : memref<8x8x128xf32, #tpu.memory_space<vmem>>, vector<1x8x128xf32>
      %47 = vector.shape_cast %46 : vector<1x8x128xf32> to vector<8x128xf32>
      %c0_20 = arith.constant 0 : index
      %c0_21 = arith.constant 0 : index
      %48 = vector.load %arg2[%c0_20, %c0_21] : memref<32x128xf32, #tpu.memory_space<vmem>>, vector<32x128xf32>
      %cst_22 = arith.constant dense<0.000000e+00> : vector<8x128xf32>
      %49 = tpu.matmul %39, %48, %cst_22 {dimension_numbers = #tpu.dot_dimension_numbers<[1], [0], [0], [1], [0, 0, 1, 1], [], []>} : vector<8x32xf32>, vector<32x128xf32>, vector<8x128xf32> -> vector<8x128xf32>
      %50 = arith.addf %47, %49 : vector<8x128xf32>
      %51 = vector.extract_strided_slice %50 {offsets = [0, 0], sizes = [8, 96], strides = [1, 1]} : vector<8x128xf32> to vector<8x96xf32>
      %52 = arith.negf %51 : vector<8x96xf32>
      %53 = math.exp %52 : vector<8x96xf32>
      %cst_23 = arith.constant 1.000000e+00 : f32
      %54 = vector.broadcast %cst_23 : f32 to vector<8x96xf32>
      %55 = arith.addf %54, %53 : vector<8x96xf32>
      %56 = arith.divf %54, %55 : vector<8x96xf32>
      %57 = vector.extract_strided_slice %56 {offsets = [0, 0], sizes = [8, 32], strides = [1, 1]} : vector<8x96xf32> to vector<8x32xf32>
      %58 = vector.extract_strided_slice %56 {offsets = [0, 32], sizes = [8, 32], strides = [1, 1]} : vector<8x96xf32> to vector<8x32xf32>
      %59 = vector.extract_strided_slice %56 {offsets = [0, 64], sizes = [8, 32], strides = [1, 1]} : vector<8x96xf32> to vector<8x32xf32>
      %60 = vector.extract_strided_slice %50 {offsets = [0, 96], sizes = [8, 32], strides = [1, 1]} : vector<8x128xf32> to vector<8x32xf32>
      %61 = math.tanh %60 : vector<8x32xf32>
      %62 = arith.mulf %58, %40 : vector<8x32xf32>
      %63 = arith.mulf %57, %61 : vector<8x32xf32>
      %64 = arith.addf %62, %63 : vector<8x32xf32>
      %65 = math.tanh %64 : vector<8x32xf32>
      %66 = arith.mulf %59, %65 : vector<8x32xf32>
      %c8_i32_24 = arith.constant 8 : i32
      %67 = arith.muli %arg0, %c8_i32_24 : i32
      %68 = arith.addi %67, %c1_i32_17 : i32
      %c12_i32_25 = arith.constant 12 : i32
      %69 = arith.cmpi slt, %68, %c12_i32_25 : i32
      %70 = arith.select %69, %66, %39 : vector<8x32xf32>
      %71 = arith.select %69, %64, %40 : vector<8x32xf32>
      %72 = arith.index_cast %c1_i32_17 : i32 to index
      %c0_26 = arith.constant 0 : index
      %c0_27 = arith.constant 0 : index
      %73 = vector.load %arg5[%72, %c0_26, %c0_27] : memref<8x8x32xf32, #tpu.memory_space<vmem>>, vector<1x8x32xf32>
      %74 = vector.shape_cast %73 : vector<1x8x32xf32> to vector<8x32xf32>
      %75 = vector.shape_cast %70 : vector<8x32xf32> to vector<1x8x32xf32>
      tpu.vector_store %arg5[%72, %c0_26, %c0_27], %75 {strides = array<i32>} : memref<8x8x32xf32, #tpu.memory_space<vmem>>, vector<1x8x32xf32>,
      %c2_i32 = arith.constant 2 : i32
      %76 = arith.index_cast %c2_i32 : i32 to index
      %c0_28 = arith.constant 0 : index
      %c0_29 = arith.constant 0 : index
      %77 = vector.load %arg1[%76, %c0_28, %c0_29] : memref<8x8x128xf32, #tpu.memory_space<vmem>>, vector<1x8x128xf32>
      %78 = vector.shape_cast %77 : vector<1x8x128xf32> to vector<8x128xf32>
      %c0_30 = arith.constant 0 : index
      %c0_31 = arith.constant 0 : index
      %79 = vector.load %arg2[%c0_30, %c0_31] : memref<32x128xf32, #tpu.memory_space<vmem>>, vector<32x128xf32>
      %cst_32 = arith.constant dense<0.000000e+00> : vector<8x128xf32>
      %80 = tpu.matmul %70, %79, %cst_32 {dimension_numbers = #tpu.dot_dimension_numbers<[1], [0], [0], [1], [0, 0, 1, 1], [], []>} : vector<8x32xf32>, vector<32x128xf32>, vector<8x128xf32> -> vector<8x128xf32>
      %81 = arith.addf %78, %80 : vector<8x128xf32>
      %82 = vector.extract_strided_slice %81 {offsets = [0, 0], sizes = [8, 96], strides = [1, 1]} : vector<8x128xf32> to vector<8x96xf32>
      %83 = arith.negf %82 : vector<8x96xf32>
      %84 = math.exp %83 : vector<8x96xf32>
      %cst_33 = arith.constant 1.000000e+00 : f32
      %85 = vector.broadcast %cst_33 : f32 to vector<8x96xf32>
      %86 = arith.addf %85, %84 : vector<8x96xf32>
      %87 = arith.divf %85, %86 : vector<8x96xf32>
      %88 = vector.extract_strided_slice %87 {offsets = [0, 0], sizes = [8, 32], strides = [1, 1]} : vector<8x96xf32> to vector<8x32xf32>
      %89 = vector.extract_strided_slice %87 {offsets = [0, 32], sizes = [8, 32], strides = [1, 1]} : vector<8x96xf32> to vector<8x32xf32>
      %90 = vector.extract_strided_slice %87 {offsets = [0, 64], sizes = [8, 32], strides = [1, 1]} : vector<8x96xf32> to vector<8x32xf32>
      %91 = vector.extract_strided_slice %81 {offsets = [0, 96], sizes = [8, 32], strides = [1, 1]} : vector<8x128xf32> to vector<8x32xf32>
      %92 = math.tanh %91 : vector<8x32xf32>
      %93 = arith.mulf %89, %71 : vector<8x32xf32>
      %94 = arith.mulf %88, %92 : vector<8x32xf32>
      %95 = arith.addf %93, %94 : vector<8x32xf32>
      %96 = math.tanh %95 : vector<8x32xf32>
      %97 = arith.mulf %90, %96 : vector<8x32xf32>
      %c8_i32_34 = arith.constant 8 : i32
      %98 = arith.muli %arg0, %c8_i32_34 : i32
      %99 = arith.addi %98, %c2_i32 : i32
      %c12_i32_35 = arith.constant 12 : i32
      %100 = arith.cmpi slt, %99, %c12_i32_35 : i32
      %101 = arith.select %100, %97, %70 : vector<8x32xf32>
      %102 = arith.select %100, %95, %71 : vector<8x32xf32>
      %103 = arith.index_cast %c2_i32 : i32 to index
      %c0_36 = arith.constant 0 : index
      %c0_37 = arith.constant 0 : index
      %104 = vector.load %arg5[%103, %c0_36, %c0_37] : memref<8x8x32xf32, #tpu.memory_space<vmem>>, vector<1x8x32xf32>
      %105 = vector.shape_cast %104 : vector<1x8x32xf32> to vector<8x32xf32>
      %106 = vector.shape_cast %101 : vector<8x32xf32> to vector<1x8x32xf32>
      tpu.vector_store %arg5[%103, %c0_36, %c0_37], %106 {strides = array<i32>} : memref<8x8x32xf32, #tpu.memory_space<vmem>>, vector<1x8x32xf32>,
      %c3_i32 = arith.constant 3 : i32
      %107 = arith.index_cast %c3_i32 : i32 to index
      %c0_38 = arith.constant 0 : index
      %c0_39 = arith.constant 0 : index
      %108 = vector.load %arg1[%107, %c0_38, %c0_39] : memref<8x8x128xf32, #tpu.memory_space<vmem>>, vector<1x8x128xf32>
      %109 = vector.shape_cast %108 : vector<1x8x128xf32> to vector<8x128xf32>
      %c0_40 = arith.constant 0 : index
      %c0_41 = arith.constant 0 : index
      %110 = vector.load %arg2[%c0_40, %c0_41] : memref<32x128xf32, #tpu.memory_space<vmem>>, vector<32x128xf32>
      %cst_42 = arith.constant dense<0.000000e+00> : vector<8x128xf32>
      %111 = tpu.matmul %101, %110, %cst_42 {dimension_numbers = #tpu.dot_dimension_numbers<[1], [0], [0], [1], [0, 0, 1, 1], [], []>} : vector<8x32xf32>, vector<32x128xf32>, vector<8x128xf32> -> vector<8x128xf32>
      %112 = arith.addf %109, %111 : vector<8x128xf32>
      %113 = vector.extract_strided_slice %112 {offsets = [0, 0], sizes = [8, 96], strides = [1, 1]} : vector<8x128xf32> to vector<8x96xf32>
      %114 = arith.negf %113 : vector<8x96xf32>
      %115 = math.exp %114 : vector<8x96xf32>
      %cst_43 = arith.constant 1.000000e+00 : f32
      %116 = vector.broadcast %cst_43 : f32 to vector<8x96xf32>
      %117 = arith.addf %116, %115 : vector<8x96xf32>
      %118 = arith.divf %116, %117 : vector<8x96xf32>
      %119 = vector.extract_strided_slice %118 {offsets = [0, 0], sizes = [8, 32], strides = [1, 1]} : vector<8x96xf32> to vector<8x32xf32>
      %120 = vector.extract_strided_slice %118 {offsets = [0, 32], sizes = [8, 32], strides = [1, 1]} : vector<8x96xf32> to vector<8x32xf32>
      %121 = vector.extract_strided_slice %118 {offsets = [0, 64], sizes = [8, 32], strides = [1, 1]} : vector<8x96xf32> to vector<8x32xf32>
      %122 = vector.extract_strided_slice %112 {offsets = [0, 96], sizes = [8, 32], strides = [1, 1]} : vector<8x128xf32> to vector<8x32xf32>
      %123 = math.tanh %122 : vector<8x32xf32>
      %124 = arith.mulf %120, %102 : vector<8x32xf32>
      %125 = arith.mulf %119, %123 : vector<8x32xf32>
      %126 = arith.addf %124, %125 : vector<8x32xf32>
      %127 = math.tanh %126 : vector<8x32xf32>
      %128 = arith.mulf %121, %127 : vector<8x32xf32>
      %c8_i32_44 = arith.constant 8 : i32
      %129 = arith.muli %arg0, %c8_i32_44 : i32
      %130 = arith.addi %129, %c3_i32 : i32
      %c12_i32_45 = arith.constant 12 : i32
      %131 = arith.cmpi slt, %130, %c12_i32_45 : i32
      %132 = arith.select %131, %128, %101 : vector<8x32xf32>
      %133 = arith.select %131, %126, %102 : vector<8x32xf32>
      %134 = arith.index_cast %c3_i32 : i32 to index
      %c0_46 = arith.constant 0 : index
      %c0_47 = arith.constant 0 : index
      %135 = vector.load %arg5[%134, %c0_46, %c0_47] : memref<8x8x32xf32, #tpu.memory_space<vmem>>, vector<1x8x32xf32>
      %136 = vector.shape_cast %135 : vector<1x8x32xf32> to vector<8x32xf32>
      %137 = vector.shape_cast %132 : vector<8x32xf32> to vector<1x8x32xf32>
      tpu.vector_store %arg5[%134, %c0_46, %c0_47], %137 {strides = array<i32>} : memref<8x8x32xf32, #tpu.memory_space<vmem>>, vector<1x8x32xf32>,
      %c4_i32 = arith.constant 4 : i32
      %138 = arith.index_cast %c4_i32 : i32 to index
      %c0_48 = arith.constant 0 : index
      %c0_49 = arith.constant 0 : index
      %139 = vector.load %arg1[%138, %c0_48, %c0_49] : memref<8x8x128xf32, #tpu.memory_space<vmem>>, vector<1x8x128xf32>
      %140 = vector.shape_cast %139 : vector<1x8x128xf32> to vector<8x128xf32>
      %c0_50 = arith.constant 0 : index
      %c0_51 = arith.constant 0 : index
      %141 = vector.load %arg2[%c0_50, %c0_51] : memref<32x128xf32, #tpu.memory_space<vmem>>, vector<32x128xf32>
      %cst_52 = arith.constant dense<0.000000e+00> : vector<8x128xf32>
      %142 = tpu.matmul %132, %141, %cst_52 {dimension_numbers = #tpu.dot_dimension_numbers<[1], [0], [0], [1], [0, 0, 1, 1], [], []>} : vector<8x32xf32>, vector<32x128xf32>, vector<8x128xf32> -> vector<8x128xf32>
      %143 = arith.addf %140, %142 : vector<8x128xf32>
      %144 = vector.extract_strided_slice %143 {offsets = [0, 0], sizes = [8, 96], strides = [1, 1]} : vector<8x128xf32> to vector<8x96xf32>
      %145 = arith.negf %144 : vector<8x96xf32>
      %146 = math.exp %145 : vector<8x96xf32>
      %cst_53 = arith.constant 1.000000e+00 : f32
      %147 = vector.broadcast %cst_53 : f32 to vector<8x96xf32>
      %148 = arith.addf %147, %146 : vector<8x96xf32>
      %149 = arith.divf %147, %148 : vector<8x96xf32>
      %150 = vector.extract_strided_slice %149 {offsets = [0, 0], sizes = [8, 32], strides = [1, 1]} : vector<8x96xf32> to vector<8x32xf32>
      %151 = vector.extract_strided_slice %149 {offsets = [0, 32], sizes = [8, 32], strides = [1, 1]} : vector<8x96xf32> to vector<8x32xf32>
      %152 = vector.extract_strided_slice %149 {offsets = [0, 64], sizes = [8, 32], strides = [1, 1]} : vector<8x96xf32> to vector<8x32xf32>
      %153 = vector.extract_strided_slice %143 {offsets = [0, 96], sizes = [8, 32], strides = [1, 1]} : vector<8x128xf32> to vector<8x32xf32>
      %154 = math.tanh %153 : vector<8x32xf32>
      %155 = arith.mulf %151, %133 : vector<8x32xf32>
      %156 = arith.mulf %150, %154 : vector<8x32xf32>
      %157 = arith.addf %155, %156 : vector<8x32xf32>
      %158 = math.tanh %157 : vector<8x32xf32>
      %159 = arith.mulf %152, %158 : vector<8x32xf32>
      %c8_i32_54 = arith.constant 8 : i32
      %160 = arith.muli %arg0, %c8_i32_54 : i32
      %161 = arith.addi %160, %c4_i32 : i32
      %c12_i32_55 = arith.constant 12 : i32
      %162 = arith.cmpi slt, %161, %c12_i32_55 : i32
      %163 = arith.select %162, %159, %132 : vector<8x32xf32>
      %164 = arith.select %162, %157, %133 : vector<8x32xf32>
      %165 = arith.index_cast %c4_i32 : i32 to index
      %c0_56 = arith.constant 0 : index
      %c0_57 = arith.constant 0 : index
      %166 = vector.load %arg5[%165, %c0_56, %c0_57] : memref<8x8x32xf32, #tpu.memory_space<vmem>>, vector<1x8x32xf32>
      %167 = vector.shape_cast %166 : vector<1x8x32xf32> to vector<8x32xf32>
      %168 = vector.shape_cast %163 : vector<8x32xf32> to vector<1x8x32xf32>
      tpu.vector_store %arg5[%165, %c0_56, %c0_57], %168 {strides = array<i32>} : memref<8x8x32xf32, #tpu.memory_space<vmem>>, vector<1x8x32xf32>,
      %c5_i32 = arith.constant 5 : i32
      %169 = arith.index_cast %c5_i32 : i32 to index
      %c0_58 = arith.constant 0 : index
      %c0_59 = arith.constant 0 : index
      %170 = vector.load %arg1[%169, %c0_58, %c0_59] : memref<8x8x128xf32, #tpu.memory_space<vmem>>, vector<1x8x128xf32>
      %171 = vector.shape_cast %170 : vector<1x8x128xf32> to vector<8x128xf32>
      %c0_60 = arith.constant 0 : index
      %c0_61 = arith.constant 0 : index
      %172 = vector.load %arg2[%c0_60, %c0_61] : memref<32x128xf32, #tpu.memory_space<vmem>>, vector<32x128xf32>
      %cst_62 = arith.constant dense<0.000000e+00> : vector<8x128xf32>
      %173 = tpu.matmul %163, %172, %cst_62 {dimension_numbers = #tpu.dot_dimension_numbers<[1], [0], [0], [1], [0, 0, 1, 1], [], []>} : vector<8x32xf32>, vector<32x128xf32>, vector<8x128xf32> -> vector<8x128xf32>
      %174 = arith.addf %171, %173 : vector<8x128xf32>
      %175 = vector.extract_strided_slice %174 {offsets = [0, 0], sizes = [8, 96], strides = [1, 1]} : vector<8x128xf32> to vector<8x96xf32>
      %176 = arith.negf %175 : vector<8x96xf32>
      %177 = math.exp %176 : vector<8x96xf32>
      %cst_63 = arith.constant 1.000000e+00 : f32
      %178 = vector.broadcast %cst_63 : f32 to vector<8x96xf32>
      %179 = arith.addf %178, %177 : vector<8x96xf32>
      %180 = arith.divf %178, %179 : vector<8x96xf32>
      %181 = vector.extract_strided_slice %180 {offsets = [0, 0], sizes = [8, 32], strides = [1, 1]} : vector<8x96xf32> to vector<8x32xf32>
      %182 = vector.extract_strided_slice %180 {offsets = [0, 32], sizes = [8, 32], strides = [1, 1]} : vector<8x96xf32> to vector<8x32xf32>
      %183 = vector.extract_strided_slice %180 {offsets = [0, 64], sizes = [8, 32], strides = [1, 1]} : vector<8x96xf32> to vector<8x32xf32>
      %184 = vector.extract_strided_slice %174 {offsets = [0, 96], sizes = [8, 32], strides = [1, 1]} : vector<8x128xf32> to vector<8x32xf32>
      %185 = math.tanh %184 : vector<8x32xf32>
      %186 = arith.mulf %182, %164 : vector<8x32xf32>
      %187 = arith.mulf %181, %185 : vector<8x32xf32>
      %188 = arith.addf %186, %187 : vector<8x32xf32>
      %189 = math.tanh %188 : vector<8x32xf32>
      %190 = arith.mulf %183, %189 : vector<8x32xf32>
      %c8_i32_64 = arith.constant 8 : i32
      %191 = arith.muli %arg0, %c8_i32_64 : i32
      %192 = arith.addi %191, %c5_i32 : i32
      %c12_i32_65 = arith.constant 12 : i32
      %193 = arith.cmpi slt, %192, %c12_i32_65 : i32
      %194 = arith.select %193, %190, %163 : vector<8x32xf32>
      %195 = arith.select %193, %188, %164 : vector<8x32xf32>
      %196 = arith.index_cast %c5_i32 : i32 to index
      %c0_66 = arith.constant 0 : index
      %c0_67 = arith.constant 0 : index
      %197 = vector.load %arg5[%196, %c0_66, %c0_67] : memref<8x8x32xf32, #tpu.memory_space<vmem>>, vector<1x8x32xf32>
      %198 = vector.shape_cast %197 : vector<1x8x32xf32> to vector<8x32xf32>
      %199 = vector.shape_cast %194 : vector<8x32xf32> to vector<1x8x32xf32>
      tpu.vector_store %arg5[%196, %c0_66, %c0_67], %199 {strides = array<i32>} : memref<8x8x32xf32, #tpu.memory_space<vmem>>, vector<1x8x32xf32>,
      %c6_i32 = arith.constant 6 : i32
      %200 = arith.index_cast %c6_i32 : i32 to index
      %c0_68 = arith.constant 0 : index
      %c0_69 = arith.constant 0 : index
      %201 = vector.load %arg1[%200, %c0_68, %c0_69] : memref<8x8x128xf32, #tpu.memory_space<vmem>>, vector<1x8x128xf32>
      %202 = vector.shape_cast %201 : vector<1x8x128xf32> to vector<8x128xf32>
      %c0_70 = arith.constant 0 : index
      %c0_71 = arith.constant 0 : index
      %203 = vector.load %arg2[%c0_70, %c0_71] : memref<32x128xf32, #tpu.memory_space<vmem>>, vector<32x128xf32>
      %cst_72 = arith.constant dense<0.000000e+00> : vector<8x128xf32>
      %204 = tpu.matmul %194, %203, %cst_72 {dimension_numbers = #tpu.dot_dimension_numbers<[1], [0], [0], [1], [0, 0, 1, 1], [], []>} : vector<8x32xf32>, vector<32x128xf32>, vector<8x128xf32> -> vector<8x128xf32>
      %205 = arith.addf %202, %204 : vector<8x128xf32>
      %206 = vector.extract_strided_slice %205 {offsets = [0, 0], sizes = [8, 96], strides = [1, 1]} : vector<8x128xf32> to vector<8x96xf32>
      %207 = arith.negf %206 : vector<8x96xf32>
      %208 = math.exp %207 : vector<8x96xf32>
      %cst_73 = arith.constant 1.000000e+00 : f32
      %209 = vector.broadcast %cst_73 : f32 to vector<8x96xf32>
      %210 = arith.addf %209, %208 : vector<8x96xf32>
      %211 = arith.divf %209, %210 : vector<8x96xf32>
      %212 = vector.extract_strided_slice %211 {offsets = [0, 0], sizes = [8, 32], strides = [1, 1]} : vector<8x96xf32> to vector<8x32xf32>
      %213 = vector.extract_strided_slice %211 {offsets = [0, 32], sizes = [8, 32], strides = [1, 1]} : vector<8x96xf32> to vector<8x32xf32>
      %214 = vector.extract_strided_slice %211 {offsets = [0, 64], sizes = [8, 32], strides = [1, 1]} : vector<8x96xf32> to vector<8x32xf32>
      %215 = vector.extract_strided_slice %205 {offsets = [0, 96], sizes = [8, 32], strides = [1, 1]} : vector<8x128xf32> to vector<8x32xf32>
      %216 = math.tanh %215 : vector<8x32xf32>
      %217 = arith.mulf %213, %195 : vector<8x32xf32>
      %218 = arith.mulf %212, %216 : vector<8x32xf32>
      %219 = arith.addf %217, %218 : vector<8x32xf32>
      %220 = math.tanh %219 : vector<8x32xf32>
      %221 = arith.mulf %214, %220 : vector<8x32xf32>
      %c8_i32_74 = arith.constant 8 : i32
      %222 = arith.muli %arg0, %c8_i32_74 : i32
      %223 = arith.addi %222, %c6_i32 : i32
      %c12_i32_75 = arith.constant 12 : i32
      %224 = arith.cmpi slt, %223, %c12_i32_75 : i32
      %225 = arith.select %224, %221, %194 : vector<8x32xf32>
      %226 = arith.select %224, %219, %195 : vector<8x32xf32>
      %227 = arith.index_cast %c6_i32 : i32 to index
      %c0_76 = arith.constant 0 : index
      %c0_77 = arith.constant 0 : index
      %228 = vector.load %arg5[%227, %c0_76, %c0_77] : memref<8x8x32xf32, #tpu.memory_space<vmem>>, vector<1x8x32xf32>
      %229 = vector.shape_cast %228 : vector<1x8x32xf32> to vector<8x32xf32>
      %230 = vector.shape_cast %225 : vector<8x32xf32> to vector<1x8x32xf32>
      tpu.vector_store %arg5[%227, %c0_76, %c0_77], %230 {strides = array<i32>} : memref<8x8x32xf32, #tpu.memory_space<vmem>>, vector<1x8x32xf32>,
      %c7_i32 = arith.constant 7 : i32
      %231 = arith.index_cast %c7_i32 : i32 to index
      %c0_78 = arith.constant 0 : index
      %c0_79 = arith.constant 0 : index
      %232 = vector.load %arg1[%231, %c0_78, %c0_79] : memref<8x8x128xf32, #tpu.memory_space<vmem>>, vector<1x8x128xf32>
      %233 = vector.shape_cast %232 : vector<1x8x128xf32> to vector<8x128xf32>
      %c0_80 = arith.constant 0 : index
      %c0_81 = arith.constant 0 : index
      %234 = vector.load %arg2[%c0_80, %c0_81] : memref<32x128xf32, #tpu.memory_space<vmem>>, vector<32x128xf32>
      %cst_82 = arith.constant dense<0.000000e+00> : vector<8x128xf32>
      %235 = tpu.matmul %225, %234, %cst_82 {dimension_numbers = #tpu.dot_dimension_numbers<[1], [0], [0], [1], [0, 0, 1, 1], [], []>} : vector<8x32xf32>, vector<32x128xf32>, vector<8x128xf32> -> vector<8x128xf32>
      %236 = arith.addf %233, %235 : vector<8x128xf32>
      %237 = vector.extract_strided_slice %236 {offsets = [0, 0], sizes = [8, 96], strides = [1, 1]} : vector<8x128xf32> to vector<8x96xf32>
      %238 = arith.negf %237 : vector<8x96xf32>
      %239 = math.exp %238 : vector<8x96xf32>
      %cst_83 = arith.constant 1.000000e+00 : f32
      %240 = vector.broadcast %cst_83 : f32 to vector<8x96xf32>
      %241 = arith.addf %240, %239 : vector<8x96xf32>
      %242 = arith.divf %240, %241 : vector<8x96xf32>
      %243 = vector.extract_strided_slice %242 {offsets = [0, 0], sizes = [8, 32], strides = [1, 1]} : vector<8x96xf32> to vector<8x32xf32>
      %244 = vector.extract_strided_slice %242 {offsets = [0, 32], sizes = [8, 32], strides = [1, 1]} : vector<8x96xf32> to vector<8x32xf32>
      %245 = vector.extract_strided_slice %242 {offsets = [0, 64], sizes = [8, 32], strides = [1, 1]} : vector<8x96xf32> to vector<8x32xf32>
      %246 = vector.extract_strided_slice %236 {offsets = [0, 96], sizes = [8, 32], strides = [1, 1]} : vector<8x128xf32> to vector<8x32xf32>
      %247 = math.tanh %246 : vector<8x32xf32>
      %248 = arith.mulf %244, %226 : vector<8x32xf32>
      %249 = arith.mulf %243, %247 : vector<8x32xf32>
      %250 = arith.addf %248, %249 : vector<8x32xf32>
      %251 = math.tanh %250 : vector<8x32xf32>
      %252 = arith.mulf %245, %251 : vector<8x32xf32>
      %c8_i32_84 = arith.constant 8 : i32
      %253 = arith.muli %arg0, %c8_i32_84 : i32
      %254 = arith.addi %253, %c7_i32 : i32
      %c12_i32_85 = arith.constant 12 : i32
      %255 = arith.cmpi slt, %254, %c12_i32_85 : i32
      %256 = arith.select %255, %252, %225 : vector<8x32xf32>
      %257 = arith.select %255, %250, %226 : vector<8x32xf32>
      %258 = arith.index_cast %c7_i32 : i32 to index
      %c0_86 = arith.constant 0 : index
      %c0_87 = arith.constant 0 : index
      %259 = vector.load %arg5[%258, %c0_86, %c0_87] : memref<8x8x32xf32, #tpu.memory_space<vmem>>, vector<1x8x32xf32>
      %260 = vector.shape_cast %259 : vector<1x8x32xf32> to vector<8x32xf32>
      %261 = vector.shape_cast %256 : vector<8x32xf32> to vector<1x8x32xf32>
      tpu.vector_store %arg5[%258, %c0_86, %c0_87], %261 {strides = array<i32>} : memref<8x8x32xf32, #tpu.memory_space<vmem>>, vector<1x8x32xf32>,
      %c8_i32_88 = arith.constant 8 : i32
      %c0_89 = arith.constant 0 : index
      %c0_90 = arith.constant 0 : index
      %262 = vector.load %arg8[%c0_89, %c0_90] : memref<8x32xf32, #tpu.memory_space<vmem>>, vector<8x32xf32>
      tpu.vector_store %arg8[%c0_89, %c0_90], %256 {strides = array<i32>} : memref<8x32xf32, #tpu.memory_space<vmem>>, vector<8x32xf32>,
      %c0_91 = arith.constant 0 : index
      %c0_92 = arith.constant 0 : index
      %263 = vector.load %arg9[%c0_91, %c0_92] : memref<8x32xf32, #tpu.memory_space<vmem>>, vector<8x32xf32>
      tpu.vector_store %arg9[%c0_91, %c0_92], %257 {strides = array<i32>} : memref<8x32xf32, #tpu.memory_space<vmem>>, vector<8x32xf32>,
    } else {
    }
    %c1_i32_4 = arith.constant 1 : i32
    %9 = arith.cmpi eq, %arg0, %c1_i32_4 : i32
    %10 = arith.extui %9 : i1 to i32
    %c0_i32_5 = arith.constant 0 : i32
    %11 = arith.cmpi ne, %10, %c0_i32_5 : i32
    scf.if %11 {
      %c0 = arith.constant 0 : index
      %c0_6 = arith.constant 0 : index
      %12 = vector.load %arg8[%c0, %c0_6] : memref<8x32xf32, #tpu.memory_space<vmem>>, vector<8x32xf32>
      %c0_7 = arith.constant 0 : index
      %c0_8 = arith.constant 0 : index
      %13 = vector.load %arg6[%c0_7, %c0_8] : memref<8x32xf32, #tpu.memory_space<vmem>>, vector<8x32xf32>
      tpu.vector_store %arg6[%c0_7, %c0_8], %12 {strides = array<i32>} : memref<8x32xf32, #tpu.memory_space<vmem>>, vector<8x32xf32>,
      %c0_9 = arith.constant 0 : index
      %c0_10 = arith.constant 0 : index
      %14 = vector.load %arg9[%c0_9, %c0_10] : memref<8x32xf32, #tpu.memory_space<vmem>>, vector<8x32xf32>
      %c0_11 = arith.constant 0 : index
      %c0_12 = arith.constant 0 : index
      %15 = vector.load %arg7[%c0_11, %c0_12] : memref<8x32xf32, #tpu.memory_space<vmem>>, vector<8x32xf32>
      tpu.vector_store %arg7[%c0_11, %c0_12], %14 {strides = array<i32>} : memref<8x32xf32, #tpu.memory_space<vmem>>, vector<8x32xf32>,
    } else {
    }
    return
  }
  func.func @transform_0(%arg0: i32) -> (i32, i32, i32) {
    %c0_i32 = arith.constant 0 : i32
    %c0_i32_0 = arith.constant 0 : i32
    %c0_i32_1 = arith.constant 0 : i32
    return %arg0, %c0_i32, %c0_i32_0 : i32, i32, i32
  }
  func.func @transform_1(%arg0: i32) -> (i32, i32) {
    %c0_i32 = arith.constant 0 : i32
    %c0_i32_0 = arith.constant 0 : i32
    %c0_i32_1 = arith.constant 0 : i32
    return %c0_i32, %c0_i32_0 : i32, i32
  }
  func.func @transform_2(%arg0: i32) -> (i32, i32) {
    %c0_i32 = arith.constant 0 : i32
    %c0_i32_0 = arith.constant 0 : i32
    %c0_i32_1 = arith.constant 0 : i32
    return %c0_i32, %c0_i32_0 : i32, i32
  }
  func.func @transform_3(%arg0: i32) -> (i32, i32) {
    %c0_i32 = arith.constant 0 : i32
    %c0_i32_0 = arith.constant 0 : i32
    %c0_i32_1 = arith.constant 0 : i32
    return %c0_i32, %c0_i32_0 : i32, i32
  }
  func.func @transform_4(%arg0: i32) -> (i32, i32, i32) {
    %c0_i32 = arith.constant 0 : i32
    %c0_i32_0 = arith.constant 0 : i32
    %c0_i32_1 = arith.constant 0 : i32
    return %arg0, %c0_i32, %c0_i32_0 : i32, i32, i32
  }
  func.func @transform_5(%arg0: i32) -> (i32, i32) {
    %c0_i32 = arith.constant 0 : i32
    %c0_i32_0 = arith.constant 0 : i32
    %c0_i32_1 = arith.constant 0 : i32
    return %c0_i32, %c0_i32_0 : i32, i32
  }
  func.func @transform_6(%arg0: i32) -> (i32, i32) {
    %c0_i32 = arith.constant 0 : i32
    %c0_i32_0 = arith.constant 0 : i32
    %c0_i32_1 = arith.constant 0 : i32
    return %c0_i32, %c0_i32_0 : i32, i32
  }
}

</mosaic_0001>

<bundles_post_ra>
// kernel: tpu_custom_call.1
= control target key start
LH: loop header
LB: loop body
LE: loop exit
PB: predicated region body
PF: predicated region fallthrough
CT: control target
= control target key end

     0   :  { %12 = vsyncpa [#allocation5], 0  ;;  %s3794_s0 = inlined_call_operand.hbm [shape: f32[16,8,128], index: 0, kind: input, shape index: {}]   ;;  %s3795_s1 = inlined_call_operand.hbm [shape: f32[32,128], index: 1, kind: input, shape index: {}]   ;;  %s3796_s2 = inlined_call_operand.hbm [shape: f32[8,32], index: 2, kind: input, shape index: {}]   ;;  %s3797_s3 = inlined_call_operand.vmem [shape: f32[8,32], index: 3, kind: input, shape index: {}]   ;;  %s3798_s4 = inlined_call_operand.hbm [shape: f32[16,8,32], index: 4, kind: output, shape index: {0}]   ;;  %s3799_s5 = inlined_call_operand.hbm [shape: f32[8,32], index: 5, kind: output, shape index: {1}]   ;;  %s3800_s6 = inlined_call_operand.hbm [shape: f32[8,32], index: 6, kind: output, shape index: {2}]  }
   0x1   :  { %14 = vsyncpa [#allocation5 + $0x1], 0 }
   0x2   :  { %15 = vsyncpa [#allocation8], 0 }
   0x3   :  { %16 = vsyncpa [#allocation6], 0 }
   0x4   :  { %18 = vsyncpa [#allocation6 + $0x1], 0 }
   0x5   :  { %19 = vsyncpa [#allocation12], 0  ;;  %s3228_s21 = smov 0   ;;  %s3230_s22 = smov 0  }
   0x6   :  { %s3232_s23 = smov 0   ;;  %s3234_s24 = smov 0  }
   0x7 LB: > { %s3249_s25 = sadd.s32 4294967295, %s3169_s24   ;;  %s2292_s26 = sadd.s32 4294967294, %s3169_s24   ;;  %s3169_s24 = sphi %s3234_s24, %s3832_s24   ;;  %s3165_s23 = sphi %s3232_s23, %s3831_s23   ;;  %s3161_s22 = sphi %s3230_s22, %s3830_s22   ;;  %s3157_s21 = sphi %s3228_s21, %s3829_s21  }
   0x8   : > { %p45_p0 = scmp.ne.s32.totalorder %s3161_s22, %s3157_s21  ;;  %p3801_p1 = scmp.eq.s32.totalorder %s3249_s25, 0 }
   0x9   : > { %p138_p3 = scmp.eq.s32.totalorder %s2292_s26, 1  ;;  %p2293_p5 = scmp.ge.s32.totalorder %s3169_s24, 1 }
   0xa   : > { %p3258_p4 = por %p3801_p1, %p45_p0  ;;  %p187_p7 = scmp.lt.s32.totalorder %s3169_s24, 3 }
   0xb   : > { %p3263_p6 = por %p138_p3, %p45_p0  ;;  %s3171_s30 = smov [#allocation7]  }
   0xc   : > { %s3804_s27 = scalar_select %p3258_p4, 1, 0 }
   0xd   : > { %s3805_s28 = scalar_select %p3263_p6, 1, 0 }
   0xe   : > { %p3269_p9 = pnand %p2293_p5, %p187_p7  ;;  %s199_s7 = sshll.u32 %s3171_s30, 4  ;;  %s3273_s7 = int_to_ptr.vmem [resolvable:$true] %s199_s7 }
   0xf   : > { %s3172_s9 = smov [#allocation9]   ;;  %s2957_s13 = scalar_lea.hbm %s3795_s1, 512 }
  0x10   : > { %p2752_p10 = pneg %p3269_p9  ;;  %s213_s10 = sshll.u32 %s3172_s9, 4  ;;  %s3284_s10 = int_to_ptr.vmem [resolvable:$true] %s213_s10 }
  0x11   : > { %p2958_p13 = scmp.ne.s32.totalorder %s3795_s1, %s2957_s13  ;;  %p2964_p7 = scmp.lt.u32.totalorder %s2957_s13, %s3795_s1 }
  0x12   : > { %p3280_p12 = pnand %p2752_p10, %p3801_p1 }
  0x14   : > { %p2959_p0 = pneg %p3280_p12 }
  0x16   : > { %p2960_p3 = pnand %p2959_p0, %p2958_p13 }
  0x18   : > { %p2961_p5 = pneg %p2960_p3 }
  0x1a   : > { %p2966_p10 = pnand %p2964_p7, %p2961_p5 }
  0x1c   : > { %2969 = shalt.err (!%p2966_p10)
}
  0x1d   : > { %s2970_s18 = scalar_lea.vmem %s3273_s7, 512  ;;  %p2978_p2 = scmp.lt.s32.totalorder %s3273_s7, %s3273_s7 }
  0x1e   : > { %p2971_p11 = scmp.ne.s32.totalorder %s3273_s7, %s2970_s18  ;;  %p2979_p13 = scmp.lt.s32.totalorder %s2970_s18, %s2970_s18 }
  0x20   : > { %p2973_p8 = pnand %p2971_p11, %p2959_p0  ;;  %p2980_p3 = por %p2979_p13, %p2978_p2 }
  0x22   : > { %p2974_p1 = pneg %p2973_p8 }
  0x24   : > { %p2981_p6 = pnand %p2980_p3, %p2974_p1 }
  0x26   : > { %2984 = shalt.err (!%p2981_p6)
}
  0x27   : > { %s3173_s19 = smov 128   ;;  %s3174_s20 = smov 8  }
  0x28   : > { %2755 = dma.hbm_to_vmem [thread:$0]  (!%p3280_p12), %s3795_s1, 512, %s3273_s7, [#allocation8], %s3173_s19, %s3173_s19, %s3174_s20  }
  0x29   : > { %s2985_s12 = scalar_lea.hbm %s3796_s2, 128 }
  0x2a   : > { %p2986_p1 = scmp.ne.s32.totalorder %s3796_s2, %s2985_s12  ;;  %p2992_p8 = scmp.lt.u32.totalorder %s2985_s12, %s3796_s2 }
  0x2c   : > { %p2988_p2 = pnand %p2986_p1, %p2959_p0 }
  0x2e   : > { %p2989_p6 = pneg %p2988_p2 }
  0x30   : > { %p2994_p11 = pnand %p2992_p8, %p2989_p6 }
  0x32   : > { %2997 = shalt.err (!%p2994_p11)
}
  0x33   : > { %s2998_s7 = scalar_lea.vmem %s3284_s10, 128  ;;  %p3006_p13 = scmp.lt.s32.totalorder %s3284_s10, %s3284_s10 }
  0x34   : > { %p2999_p5 = scmp.ne.s32.totalorder %s3284_s10, %s2998_s7  ;;  %p3007_p3 = scmp.lt.s32.totalorder %s2998_s7, %s2998_s7 }
  0x36   : > { %p3001_p7 = pnand %p2999_p5, %p2959_p0  ;;  %p3008_p1 = por %p3007_p3, %p3006_p13 }
  0x38   : > { %p3002_p10 = pneg %p3001_p7 }
  0x3a   : > { %p3009_p2 = pnand %p3008_p1, %p3002_p10 }
  0x3c   : > { %3012 = shalt.err (!%p3009_p2)
}
  0x3d   : > { %2758 = dma.hbm_to_vmem [thread:$0]  (!%p3280_p12), %s3796_s2, 128, %s3284_s10, [#allocation8]  }
  0x3e   : > { %s3342_s26 = sadd.s32 1, %s3169_s24   ;;  %s32_s8 = sadd.s32 1, %s3165_s23 }
  0x3f   : > { %s29_s30 = ssub.s32 %s3169_s24, %s3342_s26  ;;  %p39_p0 = scmp.ne.s32.totalorder %s3165_s23, %s3161_s22 }
  0x40   : > { %p30_p6 = scmp.eq.s32.totalorder %s29_s30, 0  ;;  %p40_p8 = scmp.eq.s32.totalorder %s3169_s24, 0 }
  0x41   : > { %p3808_p11 = scmp.eq.s32.totalorder %s3249_s25, 1  ;;  %p2769_p7 = scmp.lt.s32.totalorder %s3169_s24, 2 }
  0x42   : > { %s3358_s11 = scalar_select %p30_p6, %s3165_s23, %s32_s8  }
  0x43   : > { %p3352_p5 = por %p3808_p11, %p39_p0  ;;  %p41_p10 = por %p40_p8, %p39_p0 }
  0x44   : > { %s227_s12 = sand.u32 1, %s3165_s23   ;;  %s2378_s10 = sshll.u32 %s3169_s24, 10 }
  0x45   : > { %s3809_s9 = scalar_select %p3352_p5, 1, 0 }
  0x46   : > { %s2297_s13 = sshll.u32 %s227_s12, 6  ;;  %s3365_s16 = scalar_lea.hbm %s3794_s0, %s2378_s10 }
  0x47   : > { %s231_s7 = scalar_lea.vmem [#allocation4], %s2297_s13  ;;  %p3369_p12 = pnand %p2769_p7, %p41_p10 }
  0x48   : > { %s238_s17 = sshll.u32 %s231_s7, 4  ;;  %s3373_s8 = scalar_lea.sflag [#allocation5], %s227_s12  ;;  %s3367_s17 = int_to_ptr.vmem [resolvable:$true] %s238_s17 }
  0x49   : > { %s3013_s30 = scalar_lea.hbm %s3365_s16, 1024  ;;  %p3015_p3 = pneg %p3369_p12 }
  0x4a   : > { %p3014_p13 = scmp.ne.s32.totalorder %s3365_s16, %s3013_s30  ;;  %s3018_s14 = scalar_lea.hbm %s3794_s0, 2048 }
  0x4b   : > { %p3019_p0 = scmp.lt.u32.totalorder %s3365_s16, %s3794_s0  ;;  %p3020_p6 = scmp.lt.u32.totalorder %s3018_s14, %s3013_s30 }
  0x4c   : > { %p3016_p1 = pnand %p3015_p3, %p3014_p13  ;;  %p3022_p11 = scmp.lt.u32.totalorder %s3013_s30, %s3365_s16 }
  0x4d   : > { %p3021_p8 = por %p3020_p6, %p3019_p0 }
  0x4e   : > { %p3017_p2 = pneg %p3016_p1 }
  0x4f   : > { %p3023_p7 = por %p3022_p11, %p3021_p8 }
  0x51   : > { %p3024_p10 = pnand %p3023_p7, %p3017_p2 }
  0x53   : > { %3027 = shalt.err (!%p3024_p10)
}
  0x54   : > { %s3028_s12 = scalar_lea.vmem %s3367_s17, 1024  ;;  %s3175_s13 = smov [#allocation4]  }
  0x55   : > { %p3029_p13 = scmp.ne.s32.totalorder %s3367_s17, %s3028_s12  ;;  %s3033_s10 = sshll.u32 %s3175_s13, 4  ;;  %s3034_s10 = int_to_ptr.vmem [resolvable:$false] %s3033_s10 }
  0x56   : > { %s3035_s15 = scalar_lea.vmem %s3034_s10, 2048  ;;  %p3036_p4 = scmp.lt.s32.totalorder %s3367_s17, %s3034_s10 }
  0x57   : > { %p3031_p1 = pnand %p3029_p13, %p3015_p3  ;;  %p3037_p0 = scmp.lt.s32.totalorder %s3035_s15, %s3028_s12 }
  0x59   : > { %p3032_p5 = pneg %p3031_p1  ;;  %p3038_p6 = por %p3037_p0, %p3036_p4 }
  0x5b   : > { %p3039_p8 = pnand %p3038_p6, %p3032_p5 }
  0x5d   : > { %3042 = shalt.err (!%p3039_p8)
}
  0x5e   : > { %2762 = dma.hbm_to_vmem [thread:$0]  (!%p3369_p12), %s3365_s16, 1024, %s3367_s17, %s3373_s8, %s3173_s19, %s3173_s19, %s3174_s20  }
  0x5f   : > { %250 = sbr.rel (%p3269_p9) target bundleno = 11465 (0x2cc9), region = 36  ;;  %s3407_s30 = sand.u32 (!%p3269_p9), 1, %s3161_s22  }
  0x60   : > { %s2301_s14 = sshll.u32 (!%p3269_p9), %s3407_s30, 6  ;;  %s253_s7 = scalar_lea.sflag (!%p3269_p9), [#allocation5], %s3407_s30 }
  0x61   : > { %s3411_s12 = scalar_lea.vmem (!%p3269_p9), [#allocation4], %s2301_s14  ;;  %p3811_p4 = scmp.ne.s32.totalorder (!%p3269_p9), %s3804_s27, 0 }
  0x66   : > { %3140 = dma.done.wait (%p3811_p4), %s253_s7, 1024  }
  0x67   : > { %3142 = vsyncadd (%p3811_p4), %s253_s7, 4294966272  ;;  %p3812_p5 = scmp.eq.s32.totalorder %s3249_s25, 0 }
  0x69   : > { %3144 = dma.done.wait (%p3812_p5), [#allocation8], 640   ;;  %p3813_p9 = pmov %p3812_p5 }
  0x6a   : > { %s3421_s29 = scalar_lea.vmem [#allocation10], %s2301_s14  ;;  %p3814_p12 = scmp.ne.s32.totalorder %s3249_s25, 0 }
  0x6b   : > { %3146 = vsyncadd (%p3813_p9), [#allocation8], 4294966656  ;;  %v299_v0 = vld [vmem:[#allocation9] sm:$0xff] (!%p3814_p12)  ;;  %vm300_vm0 = vcmask (!%p3814_p12), 261120   ;;  %v302_v1 = vld [vmem:[%s3797_s3] sm:$0xff] (!%p3814_p12) }
  0x6c   : > { %298 = sbr.rel (%p3814_p12) target bundleno = 115 (0x73), region = 52  ;;  %301 = vst.msk [vmem:[#allocation2] sm:$0xff] (!%p3814_p12), %vm300_vm0, %v299_v0  ;;  %303 = vst.msk [vmem:[#allocation3] sm:$0xff] (!%p3814_p12), %vm300_vm0, %v302_v1 }
  0x73 PF: > { %p3815_p3 = scmp.eq.s32.totalorder %s3249_s25, 1 }
  0x74   : > { %v311_v2 = vld [vmem:[#allocation7] sm:$0xff] (!%p3815_p3)  ;;  %v312_v3 = vld [vmem:[#allocation7 + $0x8] sm:$0xff] (!%p3815_p3)  ;;  %v313_v4 = vld [vmem:[#allocation7 + $0x10] sm:$0xff] (!%p3815_p3)  ;;  %v3176_v5 = vmov (!%p3815_p3), 0.0|0.0   ;;  %vm3177_vm1 = vmmov (!%p3815_p3), 0   ;;  %v3178_v8 = vmov (!%p3815_p3), 0.0  }
  0x75   : > { %307 = sbr.rel (%p3815_p3) target bundleno = 5743 (0x166f), region = 56  ;;  %2636 = vmatprep.subr.bf16.mxu0 (!%p3815_p3), %v3176_v5  ;;  %v3431_v6 = vpack.c.bf16 (!%p3815_p3), %v312_v3, %v311_v2  ;;  %v314_v7 = vld [vmem:[#allocation7 + $0x18] sm:$0xff] (!%p3815_p3)  ;;  %2468 = vmatprep.mubr.msk.f32.mxu0 (!%p3815_p3), %vm3177_vm1, %v3178_v8  ;;  %v308_v10 = vld [vmem:[#allocation2] sm:$0xff] (!%p3815_p3)  ;;  %vm315_vm2 = vcmask (!%p3815_p3), 261120   ;;  %v310_v11 = vld [vmem:[%s3411_s12] sm:$0xff] (!%p3815_p3)  ;;  %s3179_s27 = smov (!%p3815_p3), 32  }
  0x76   : > { %2642 = vmatprep.subr.bf16.mxu1 (!%p3815_p3), %v3176_v5  ;;  %2479 = vmatprep.mubr.msk.f32.mxu1 (!%p3815_p3), %vm3177_vm1, %v3178_v8  ;;  %v3439_v9 = vpack.c.bf16 (!%p3815_p3), %v314_v7, %v313_v4  ;;  %v309_v16 = vld [vmem:[#allocation3] sm:$0xff] (!%p3815_p3)  ;;  %s3180_s16 = smov (!%p3815_p3), 64   ;;  %v2309_v31 = vld [vmem:[%s3411_s12 + $0x8] sm:$0xff] (!%p3815_p3)  ;;  %v2313_v49 = vld [vmem:[%s3411_s12 + $0x10] sm:$0xff] (!%p3815_p3)  ;;  %s3181_s17 = smov (!%p3815_p3), 96  }
  0x77   : > { %2638 = vmatpush3.bf16.msra.mxu0 (!%p3815_p3), %v3431_v6  ;;  %2644 = vmatpush3.bf16.msra.mxu1 (!%p3815_p3), %v3431_v6  ;;  %v2317_v3 = vld [vmem:[%s3411_s12 + $0x18] sm:$0xff] (!%p3815_p3) }
  0x78   : > { %2639 = vmatprep.subr.bf16.mxu0 (!%p3815_p3), %v3176_v5  ;;  %2645 = vmatprep.subr.bf16.mxu1 (!%p3815_p3), %v3176_v5 }
  0x7b   : > { %2641 = vmatpush3.bf16.msra.mxu0 (!%p3815_p3), %v3439_v9  ;;  %2647 = vmatpush3.bf16.msra.mxu1 (!%p3815_p3), %v3439_v9 }
  0x7c   : > { %2648 = vmatprep.subr.bf16.mxu0 %v3176_v5  ;;  %2654 = vmatprep.subr.bf16.mxu1 %v3176_v5 }
  0x7e   : > { %2469 = vmatmul.mubr.msk.f32.vlgmr.msra.gmra.mrb[0].mxu0 %vm315_vm2, %v308_v10 }
  0x7f   : > { %2650 = vmatpush3.bf16.msra.mxu0 %v3431_v6  ;;  %2490 = vmatprep.mubr.msk.f32.mxu0 %vm3177_vm1, %v3178_v8 }
  0x80   : > { %2651 = vmatprep.subr.bf16.mxu0 %v3176_v5 }
  0x83   : > { %2653 = vmatpush3.bf16.msra.mxu0 %v3439_v9 }
  0x84   : > { %2660 = vmatprep.subr.bf16.mxu0 %v3176_v5 }
 0x151   : > { %v385_v12 = vpop.f32.mrb[0].mxu0 }
 0x152   : > { %v389_v13 = vadd.f32 %v385_v12, %v310_v11  ;;  %v2470_v14 = vpop.f32.mrb[1].mxu0 }
 0x154   : > { %2829 = vtanh.f32 %v389_v13  ;;  %v2308_v17 = vmul.f32 -1.442695, %v389_v13 }
 0x156   : > { %2831 = vpow2.f32 %v2308_v17 }
 0x15e   : > { %v2830_v15 = vpop.eup %2829 }
 0x15f   : > { %403 = vrot.lane.b32.xlu0 %v2830_v15, %s3179_s27 }
 0x160   : > { %v2832_v18 = vpop.eup %2831 }
 0x161   : > { %v393_v19 = vadd.f32 1.0, %v2832_v18 }
 0x163   : > { %398 = vrot.lane.b32.xlu0 %v309_v16, %s3179_s27  ;;  %2833 = vrcp.f32 %v393_v19 }
 0x16d   : > { %v2834_v20 = vpop.eup %2833 }
 0x1d1   : > { %v404_v21 = vpop.permute.xlu0 %403 }
 0x1d2   : > { %v406_v22 = vmul.f32 %v2834_v20, %v404_v21 }
 0x1d4   : > { %408 = vrot.lane.b32.xlu1 %v406_v22, %s3179_s27 }
 0x1d5   : > { %v399_v23 = vpop.permute.xlu0 %398 }
 0x1d6   : > { %v401_v24 = vmul.f32 %v2834_v20, %v399_v23 }
 0x246   : > { %v409_v25 = vpop.permute.xlu1 %408 }
 0x247   : > { %v411_v26 = vadd.f32 %v409_v25, %v401_v24  ;;  %v2321_v25 = vld [vmem:[%s3411_s12 + $0x20] sm:$0xff] }
 0x249   : > { %2835 = vtanh.f32 %v411_v26 }
 0x253   : > { %v2836_v27 = vpop.eup %2835 }
 0x254   : > { %414 = vrot.lane.b32.xlu1 %v2836_v27, %s3179_s27 }
 0x2c6   : > { %v415_v28 = vpop.permute.xlu1 %414 }
 0x2c7   : > { %v417_v29 = vmul.f32 %v2834_v20, %v415_v28 }
 0x2c9   : > { %419 = vrot.lane.b32.xlu0 %v417_v29, %s3180_s16 }
 0x33b   : > { %v420_v30 = vpop.permute.xlu0 %419 }
 0x33c   : > { %422 = vst.msk [vmem:[%s3421_s29] sm:$0xff] %vm315_vm2, %v420_v30  ;;  %2480 = vmatmul.mubr.msk.f32.vlgmr.msra.gmra.mrb[0].mxu1 %vm315_vm2, %v420_v30 }
 0x33d   : > { %2656 = vmatpush3.bf16.msra.mxu1 %v3431_v6  ;;  %2501 = vmatprep.mubr.msk.f32.mxu1 %vm3177_vm1, %v3178_v8 }
 0x33e   : > { %2657 = vmatprep.subr.bf16.mxu1 %v3176_v5 }
 0x341   : > { %2659 = vmatpush3.bf16.msra.mxu1 %v3439_v9 }
 0x342   : > { %2666 = vmatprep.subr.bf16.mxu1 %v3176_v5 }
 0x40f   : > { %v497_v32 = vpop.f32.mrb[0].mxu1 }
 0x410   : > { %v501_v33 = vadd.f32 %v2309_v31, %v497_v32  ;;  %v2481_v34 = vpop.f32.mrb[1].mxu1 }
 0x412   : > { %2837 = vtanh.f32 %v501_v33  ;;  %v2311_v36 = vmul.f32 -1.442695, %v501_v33 }
 0x414   : > { %2839 = vpow2.f32 %v2311_v36 }
 0x41c   : > { %v2838_v35 = vpop.eup %2837 }
 0x41d   : > { %511 = vrot.lane.b32.xlu1 %v2838_v35, %s3179_s27 }
 0x41e   : > { %v2840_v37 = vpop.eup %2839 }
 0x41f   : > { %v505_v38 = vadd.f32 1.0, %v2840_v37 }
 0x421   : > { %2841 = vrcp.f32 %v505_v38 }
 0x42b   : > { %v2842_v39 = vpop.eup %2841 }
 0x42c   : > { %v509_v42 = vmul.f32 %v2842_v39, %v411_v26 }
 0x48f   : > { %v512_v40 = vpop.permute.xlu1 %511 }
 0x490   : > { %v514_v41 = vmul.f32 %v2842_v39, %v512_v40 }
 0x492   : > { %516 = vrot.lane.b32.xlu0 %v514_v41, %s3179_s27 }
 0x504   : > { %v517_v43 = vpop.permute.xlu0 %516 }
 0x505   : > { %v519_v44 = vadd.f32 %v517_v43, %v509_v42  ;;  %v2325_v43 = vld [vmem:[%s3411_s12 + $0x28] sm:$0xff] }
 0x507   : > { %2843 = vtanh.f32 %v519_v44 }
 0x511   : > { %v2844_v45 = vpop.eup %2843 }
 0x512   : > { %522 = vrot.lane.b32.xlu1 %v2844_v45, %s3179_s27 }
 0x584   : > { %v523_v46 = vpop.permute.xlu1 %522 }
 0x585   : > { %v525_v47 = vmul.f32 %v2842_v39, %v523_v46 }
 0x587   : > { %527 = vrot.lane.b32.xlu0 %v525_v47, %s3180_s16 }
 0x5f9   : > { %v528_v48 = vpop.permute.xlu0 %527 }
 0x5fa   : > { %2312 = vst.msk [vmem:[%s3421_s29 + $0x8] sm:$0xff] %vm315_vm2, %v528_v48  ;;  %2491 = vmatmul.mubr.msk.f32.vlgmr.msra.gmra.mrb[2].mxu0 %vm315_vm2, %v528_v48 }
 0x5fb   : > { %2662 = vmatpush3.bf16.msra.mxu0 %v3431_v6  ;;  %2512 = vmatprep.mubr.msk.f32.mxu0 %vm3177_vm1, %v3178_v8 }
 0x5fc   : > { %2663 = vmatprep.subr.bf16.mxu0 %v3176_v5 }
 0x5ff   : > { %2665 = vmatpush3.bf16.msra.mxu0 %v3439_v9 }
 0x600   : > { %2672 = vmatprep.subr.bf16.mxu0 %v3176_v5 }
 0x6cd   : > { %v606_v50 = vpop.f32.mrb[2].mxu0 }
 0x6ce   : > { %v610_v51 = vadd.f32 %v2313_v49, %v606_v50  ;;  %v2492_v52 = vpop.f32.mrb[3].mxu0 }
 0x6d0   : > { %2845 = vtanh.f32 %v610_v51  ;;  %v2315_v54 = vmul.f32 -1.442695, %v610_v51 }
 0x6d2   : > { %2847 = vpow2.f32 %v2315_v54 }
 0x6da   : > { %v2846_v53 = vpop.eup %2845 }
 0x6db   : > { %620 = vrot.lane.b32.xlu1 %v2846_v53, %s3179_s27 }
 0x6dc   : > { %v2848_v55 = vpop.eup %2847 }
 0x6dd   : > { %v614_v56 = vadd.f32 1.0, %v2848_v55 }
 0x6df   : > { %2849 = vrcp.f32 %v614_v56 }
 0x6e9   : > { %v2850_v57 = vpop.eup %2849 }
 0x6ea   : > { %v618_v60 = vmul.f32 %v2850_v57, %v519_v44 }
 0x74d   : > { %v621_v58 = vpop.permute.xlu1 %620 }
 0x74e   : > { %v623_v59 = vmul.f32 %v2850_v57, %v621_v58 }
 0x750   : > { %625 = vrot.lane.b32.xlu0 %v623_v59, %s3179_s27 }
 0x7c2   : > { %v626_v61 = vpop.permute.xlu0 %625 }
 0x7c3   : > { %v628_v62 = vadd.f32 %v626_v61, %v618_v60 }
 0x7c5   : > { %2851 = vtanh.f32 %v628_v62 }
 0x7cf   : > { %v2852_v63 = vpop.eup %2851 }
 0x7d0   : > { %631 = vrot.lane.b32.xlu1 %v2852_v63, %s3179_s27 }
 0x842   : > { %v632_v0 = vpop.permute.xlu1 %631 }
 0x843   : > { %v634_v1 = vmul.f32 %v2850_v57, %v632_v0  ;;  %v2329_v57 = vld [vmem:[%s3411_s12 + $0x30] sm:$0xff] }
 0x845   : > { %636 = vrot.lane.b32.xlu0 %v634_v1, %s3180_s16 }
 0x8b7   : > { %v637_v2 = vpop.permute.xlu0 %636 }
 0x8b8   : > { %2316 = vst.msk [vmem:[%s3421_s29 + $0x10] sm:$0xff] %vm315_vm2, %v637_v2  ;;  %2502 = vmatmul.mubr.msk.f32.vlgmr.msra.gmra.mrb[2].mxu1 %vm315_vm2, %v637_v2 }
 0x8b9   : > { %2668 = vmatpush3.bf16.msra.mxu1 %v3431_v6  ;;  %2523 = vmatprep.mubr.msk.f32.mxu1 %vm3177_vm1, %v3178_v8 }
 0x8ba   : > { %2669 = vmatprep.subr.bf16.mxu1 %v3176_v5 }
 0x8bd   : > { %2671 = vmatpush3.bf16.msra.mxu1 %v3439_v9 }
 0x8be   : > { %2678 = vmatprep.subr.bf16.mxu1 %v3176_v5 }
 0x98b   : > { %v715_v4 = vpop.f32.mrb[2].mxu1 }
 0x98c   : > { %v719_v7 = vadd.f32 %v2317_v3, %v715_v4  ;;  %v2503_v10 = vpop.f32.mrb[3].mxu1 }
 0x98e   : > { %2853 = vtanh.f32 %v719_v7  ;;  %v2319_v12 = vmul.f32 -1.442695, %v719_v7 }
 0x990   : > { %2855 = vpow2.f32 %v2319_v12 }
 0x998   : > { %v2854_v11 = vpop.eup %2853 }
 0x999   : > { %729 = vrot.lane.b32.xlu1 %v2854_v11, %s3179_s27 }
 0x99a   : > { %v2856_v13 = vpop.eup %2855 }
 0x99b   : > { %v723_v14 = vadd.f32 1.0, %v2856_v13 }
 0x99d   : > { %2857 = vrcp.f32 %v723_v14 }
 0x9a7   : > { %v2858_v15 = vpop.eup %2857 }
 0x9a8   : > { %v727_v18 = vmul.f32 %v2858_v15, %v628_v62 }
 0xa0b   : > { %v730_v16 = vpop.permute.xlu1 %729 }
 0xa0c   : > { %v732_v17 = vmul.f32 %v2858_v15, %v730_v16 }
 0xa0e   : > { %734 = vrot.lane.b32.xlu0 %v732_v17, %s3179_s27 }
 0xa80   : > { %v735_v19 = vpop.permute.xlu0 %734 }
 0xa81   : > { %v737_v20 = vadd.f32 %v735_v19, %v727_v18 }
 0xa83   : > { %2859 = vtanh.f32 %v737_v20 }
 0xa8d   : > { %v2860_v21 = vpop.eup %2859 }
 0xa8e   : > { %740 = vrot.lane.b32.xlu1 %v2860_v21, %s3179_s27 }
 0xb00   : > { %v741_v22 = vpop.permute.xlu1 %740 }
 0xb01   : > { %v743_v23 = vmul.f32 %v2858_v15, %v741_v22  ;;  %v2333_v15 = vld [vmem:[%s3411_s12 + $0x38] sm:$0xff] }
 0xb03   : > { %745 = vrot.lane.b32.xlu0 %v743_v23, %s3180_s16 }
 0xb75   : > { %v746_v24 = vpop.permute.xlu0 %745 }
 0xb76   : > { %2320 = vst.msk [vmem:[%s3421_s29 + $0x18] sm:$0xff] %vm315_vm2, %v746_v24  ;;  %2513 = vmatmul.mubr.msk.f32.vlgmr.msra.gmra.mrb[4].mxu0 %vm315_vm2, %v746_v24 }
 0xb77   : > { %2674 = vmatpush3.bf16.msra.mxu0 %v3431_v6  ;;  %2534 = vmatprep.mubr.msk.f32.mxu0 %vm3177_vm1, %v3178_v8 }
 0xb78   : > { %2675 = vmatprep.subr.bf16.mxu0 %v3176_v5 }
 0xb7b   : > { %2677 = vmatpush3.bf16.msra.mxu0 %v3439_v9 }
 0xc49   : > { %v824_v26 = vpop.f32.mrb[4].mxu0 }
 0xc4a   : > { %v828_v27 = vadd.f32 %v2321_v25, %v824_v26  ;;  %v2514_v28 = vpop.f32.mrb[5].mxu0 }
 0xc4c   : > { %2861 = vtanh.f32 %v828_v27  ;;  %v2323_v30 = vmul.f32 -1.442695, %v828_v27 }
 0xc4e   : > { %2863 = vpow2.f32 %v2323_v30 }
 0xc56   : > { %v2862_v29 = vpop.eup %2861 }
 0xc57   : > { %838 = vrot.lane.b32.xlu1 %v2862_v29, %s3179_s27 }
 0xc58   : > { %v2864_v31 = vpop.eup %2863 }
 0xc59   : > { %v832_v32 = vadd.f32 1.0, %v2864_v31 }
 0xc5b   : > { %2865 = vrcp.f32 %v832_v32 }
 0xc65   : > { %v2866_v33 = vpop.eup %2865 }
 0xc66   : > { %v836_v36 = vmul.f32 %v2866_v33, %v737_v20 }
 0xcc9   : > { %v839_v34 = vpop.permute.xlu1 %838 }
 0xcca   : > { %v841_v35 = vmul.f32 %v2866_v33, %v839_v34 }
 0xccc   : > { %843 = vrot.lane.b32.xlu0 %v841_v35, %s3179_s27 }
 0xd3e   : > { %v844_v37 = vpop.permute.xlu0 %843 }
 0xd3f   : > { %v846_v38 = vadd.f32 %v844_v37, %v836_v36 }
 0xd41   : > { %2867 = vtanh.f32 %v846_v38 }
 0xd4b   : > { %v2868_v39 = vpop.eup %2867 }
 0xd4c   : > { %849 = vrot.lane.b32.xlu1 %v2868_v39, %s3179_s27 }
 0xdbe   : > { %v850_v40 = vpop.permute.xlu1 %849 }
 0xdbf   : > { %v852_v41 = vmul.f32 %v2866_v33, %v850_v40 }
 0xdc1   : > { %854 = vrot.lane.b32.xlu0 %v852_v41, %s3180_s16 }
 0xe33   : > { %v855_v42 = vpop.permute.xlu0 %854 }
 0xe34   : > { %2324 = vst.msk [vmem:[%s3421_s29 + $0x20] sm:$0xff] %vm315_vm2, %v855_v42  ;;  %2524 = vmatmul.mubr.msk.f32.vlgmr.msra.gmra.mrb[4].mxu1 %vm315_vm2, %v855_v42 }
 0xe35   : > { %2680 = vmatpush3.bf16.msra.mxu1 %v3431_v6  ;;  %2545 = vmatprep.mubr.msk.f32.mxu1 %vm3177_vm1, %v3178_v8 }
 0xe36   : > { %2681 = vmatprep.subr.bf16.mxu1 %v3176_v5 }
 0xe39   : > { %2683 = vmatpush3.bf16.msra.mxu1 %v3439_v9 }
 0xf07   : > { %v933_v44 = vpop.f32.mrb[4].mxu1 }
 0xf08   : > { %v937_v45 = vadd.f32 %v2325_v43, %v933_v44  ;;  %v2525_v46 = vpop.f32.mrb[5].mxu1 }
 0xf0a   : > { %2869 = vtanh.f32 %v937_v45  ;;  %v2327_v48 = vmul.f32 -1.442695, %v937_v45 }
 0xf0c   : > { %2871 = vpow2.f32 %v2327_v48 }
 0xf14   : > { %v2870_v47 = vpop.eup %2869 }
 0xf15   : > { %947 = vrot.lane.b32.xlu1 %v2870_v47, %s3179_s27 }
 0xf16   : > { %v2872_v49 = vpop.eup %2871 }
 0xf17   : > { %v941_v50 = vadd.f32 1.0, %v2872_v49 }
 0xf19   : > { %2873 = vrcp.f32 %v941_v50 }
 0xf23   : > { %v2874_v6 = vpop.eup %2873 }
 0xf24   : > { %v945_v9 = vmul.f32 %v2874_v6, %v846_v38 }
 0xf87   : > { %v948_v8 = vpop.permute.xlu1 %947 }
 0xf88   : > { %v950_v5 = vmul.f32 %v2874_v6, %v948_v8 }
 0xf8a   : > { %952 = vrot.lane.b32.xlu0 %v950_v5, %s3179_s27 }
 0xffc   : > { %v953_v51 = vpop.permute.xlu0 %952 }
 0xffd   : > { %v955_v52 = vadd.f32 %v953_v51, %v945_v9 }
 0xfff   : > { %2875 = vtanh.f32 %v955_v52 }
0x1009   : > { %v2876_v53 = vpop.eup %2875 }
0x100a   : > { %958 = vrot.lane.b32.xlu1 %v2876_v53, %s3179_s27 }
0x107c   : > { %v959_v54 = vpop.permute.xlu1 %958 }
0x107d   : > { %v961_v55 = vmul.f32 %v2874_v6, %v959_v54 }
0x107f   : > { %963 = vrot.lane.b32.xlu0 %v961_v55, %s3180_s16 }
0x10f1   : > { %v964_v56 = vpop.permute.xlu0 %963 }
0x10f2   : > { %2328 = vst.msk [vmem:[%s3421_s29 + $0x28] sm:$0xff] %vm315_vm2, %v964_v56  ;;  %2535 = vmatmul.mubr.msk.f32.vlgmr.msra.gmra.mrb[6].mxu0 %vm315_vm2, %v964_v56 }
0x11c5   : > { %v1042_v58 = vpop.f32.mrb[6].mxu0 }
0x11c6   : > { %v1046_v59 = vadd.f32 %v2329_v57, %v1042_v58  ;;  %v2536_v60 = vpop.f32.mrb[7].mxu0 }
0x11c8   : > { %2877 = vtanh.f32 %v1046_v59  ;;  %v2331_v62 = vmul.f32 -1.442695, %v1046_v59 }
0x11ca   : > { %2879 = vpow2.f32 %v2331_v62 }
0x11d2   : > { %v2878_v61 = vpop.eup %2877 }
0x11d3   : > { %1056 = vrot.lane.b32.xlu1 %v2878_v61, %s3179_s27 }
0x11d4   : > { %v2880_v63 = vpop.eup %2879 }
0x11d5   : > { %v1050_v0 = vadd.f32 1.0, %v2880_v63 }
0x11d7   : > { %2881 = vrcp.f32 %v1050_v0 }
0x11e1   : > { %v2882_v1 = vpop.eup %2881 }
0x11e2   : > { %v1054_v4 = vmul.f32 %v2882_v1, %v955_v52 }
0x1245   : > { %v1057_v2 = vpop.permute.xlu1 %1056 }
0x1246   : > { %v1059_v3 = vmul.f32 %v2882_v1, %v1057_v2 }
0x1248   : > { %1061 = vrot.lane.b32.xlu0 %v1059_v3, %s3179_s27 }
0x12ba   : > { %v1062_v7 = vpop.permute.xlu0 %1061 }
0x12bb   : > { %v1064_v10 = vadd.f32 %v1062_v7, %v1054_v4 }
0x12bd   : > { %2883 = vtanh.f32 %v1064_v10 }
0x12c7   : > { %v2884_v11 = vpop.eup %2883 }
0x12c8   : > { %1067 = vrot.lane.b32.xlu1 %v2884_v11, %s3179_s27 }
0x133a   : > { %v1068_v12 = vpop.permute.xlu1 %1067 }
0x133b   : > { %v1070_v13 = vmul.f32 %v2882_v1, %v1068_v12 }
0x133d   : > { %1072 = vrot.lane.b32.xlu0 %v1070_v13, %s3180_s16 }
0x13af   : > { %v1073_v14 = vpop.permute.xlu0 %1072 }
0x13b0   : > { %2332 = vst.msk [vmem:[%s3421_s29 + $0x30] sm:$0xff] %vm315_vm2, %v1073_v14  ;;  %2546 = vmatmul.mubr.msk.f32.vlgmr.msra.gmra.mrb[6].mxu1 %vm315_vm2, %v1073_v14 }
0x1483   : > { %v1151_v16 = vpop.f32.mrb[6].mxu1 }
0x1484   : > { %v1155_v17 = vadd.f32 %v2333_v15, %v1151_v16  ;;  %v2547_v18 = vpop.f32.mrb[7].mxu1 }
0x1486   : > { %2885 = vtanh.f32 %v1155_v17  ;;  %v2335_v20 = vmul.f32 -1.442695, %v1155_v17 }
0x1488   : > { %2887 = vpow2.f32 %v2335_v20 }
0x1490   : > { %v2886_v19 = vpop.eup %2885 }
0x1491   : > { %1165 = vrot.lane.b32.xlu1 %v2886_v19, %s3179_s27 }
0x1492   : > { %v2888_v21 = vpop.eup %2887 }
0x1493   : > { %v1159_v22 = vadd.f32 1.0, %v2888_v21 }
0x1495   : > { %2889 = vrcp.f32 %v1159_v22 }
0x149f   : > { %v2890_v23 = vpop.eup %2889 }
0x14a0   : > { %v1163_v26 = vmul.f32 %v2890_v23, %v1064_v10 }
0x1503   : > { %v1166_v24 = vpop.permute.xlu1 %1165 }
0x1504   : > { %v1168_v25 = vmul.f32 %v2890_v23, %v1166_v24 }
0x1506   : > { %1170 = vrot.lane.b32.xlu0 %v1168_v25, %s3179_s27 }
0x1578   : > { %v1171_v27 = vpop.permute.xlu0 %1170 }
0x1579   : > { %v1173_v28 = vadd.f32 %v1171_v27, %v1163_v26 }
0x157b   : > { %2891 = vtanh.f32 %v1173_v28 }
0x1585   : > { %v2892_v29 = vpop.eup %2891 }
0x1586   : > { %1176 = vrot.lane.b32.xlu1 %v2892_v29, %s3179_s27 }
0x158a   : > { %1188 = vrot.lane.b32.xlu1 %v1173_v28, %s3181_s17 }
0x15f8   : > { %v1177_v30 = vpop.permute.xlu1 %1176 }
0x15f9   : > { %v1179_v31 = vmul.f32 %v2890_v23, %v1177_v30 }
0x15fb   : > { %1181 = vrot.lane.b32.xlu0 %v1179_v31, %s3180_s16 }
0x15fc   : > { %v1189_v32 = vpop.permute.xlu1 %1188 }
0x15fd   : > { %1191 = vst.msk [vmem:[#allocation3] sm:$0xff] %vm315_vm2, %v1189_v32 }
0x166d   : > { %v1182_v33 = vpop.permute.xlu0 %1181 }
0x166e   : > { %2336 = vst.msk [vmem:[%s3421_s29 + $0x38] sm:$0xff] %vm315_vm2, %v1182_v33  ;;  %1186 = vst.msk [vmem:[#allocation2] sm:$0xff] %vm315_vm2, %v1182_v33 }
0x166f PF: > { %p2337_p2 = scmp.ne.s32.totalorder %s3249_s25, 1 }
0x1670   : > { %v1199_v34 = vld [vmem:[#allocation7] sm:$0xff] (!%p2337_p2)  ;;  %v1200_v35 = vld [vmem:[#allocation7 + $0x8] sm:$0xff] (!%p2337_p2)  ;;  %v1201_v36 = vld [vmem:[#allocation7 + $0x10] sm:$0xff] (!%p2337_p2)  ;;  %v3182_v37 = vmov (!%p2337_p2), 0.0|0.0   ;;  %vm3183_vm3 = vmmov (!%p2337_p2), 0   ;;  %v3184_v40 = vmov (!%p2337_p2), 0.0  }
0x1671   : > { %1195 = sbr.rel (%p2337_p2) target bundleno = 11387 (0x2c7b), region = 60  ;;  %2684 = vmatprep.subr.bf16.mxu0 (!%p2337_p2), %v3182_v37  ;;  %v3551_v38 = vpack.c.bf16 (!%p2337_p2), %v1200_v35, %v1199_v34  ;;  %v1202_v39 = vld [vmem:[#allocation7 + $0x18] sm:$0xff] (!%p2337_p2)  ;;  %2556 = vmatprep.mubr.msk.f32.mxu0 (!%p2337_p2), %vm3183_vm3, %v3184_v40  ;;  %vm1203_vm4 = vcmask (!%p2337_p2), 261120   ;;  %v1198_v43 = vld [vmem:[%s3411_s12] sm:$0xff] (!%p2337_p2)  ;;  %s3185_s18 = smov (!%p2337_p2), 32   ;;  %v2341_v63 = vld [vmem:[%s3411_s12 + $0x8] sm:$0xff] (!%p2337_p2) }
0x1672   : > { %2690 = vmatprep.subr.bf16.mxu1 (!%p2337_p2), %v3182_v37  ;;  %2567 = vmatprep.mubr.msk.f32.mxu1 (!%p2337_p2), %vm3183_vm3, %v3184_v40  ;;  %v3559_v41 = vpack.c.bf16 (!%p2337_p2), %v1202_v39, %v1201_v36  ;;  %v1197_v48 = vld [vmem:[#allocation3] sm:$0xff] (!%p2337_p2)  ;;  %s3186_s8 = smov (!%p2337_p2), 64   ;;  %s3582_s13 = sshll.u32 (!%p2337_p2), %s3249_s25, 3  ;;  %v2345_v24 = vld [vmem:[%s3411_s12 + $0x10] sm:$0xff] (!%p2337_p2) }
0x1673   : > { %2686 = vmatpush3.bf16.msra.mxu0 (!%p2337_p2), %v3551_v38  ;;  %2692 = vmatpush3.bf16.msra.mxu1 (!%p2337_p2), %v3551_v38  ;;  %p1307_p11 = scmp.lt.s32.totalorder (!%p2337_p2), %s3582_s13, 12  ;;  %s1424_s15 = sadd.s32 (!%p2337_p2), 1, %s3582_s13 }
0x1674   : > { %2687 = vmatprep.subr.bf16.mxu0 (!%p2337_p2), %v3182_v37  ;;  %2693 = vmatprep.subr.bf16.mxu1 (!%p2337_p2), %v3182_v37  ;;  %p1425_p7 = scmp.lt.s32.totalorder (!%p2337_p2), %s1424_s15, 12  ;;  %s1540_s7 = sadd.s32 (!%p2337_p2), 2, %s3582_s13 }
0x1675   : > { %v1196_v42 = vld [vmem:[#allocation2] sm:$0xff] (!%p2337_p2)  ;;  %p1541_p10 = scmp.lt.s32.totalorder (!%p2337_p2), %s1540_s7, 12  ;;  %s1656_s20 = sadd.s32 (!%p2337_p2), 3, %s3582_s13 }
0x1676   : > { %p1657_p13 = scmp.lt.s32.totalorder (!%p2337_p2), %s1656_s20, 12  ;;  %s1772_s16 = sadd.s32 (!%p2337_p2), 4, %s3582_s13 }
0x1677   : > { %2689 = vmatpush3.bf16.msra.mxu0 (!%p2337_p2), %v3559_v41  ;;  %2695 = vmatpush3.bf16.msra.mxu1 (!%p2337_p2), %v3559_v41  ;;  %p1773_p1 = scmp.lt.s32.totalorder (!%p2337_p2), %s1772_s16, 12  ;;  %s3187_s20 = smov (!%p2337_p2), 96  }
0x1678   : > { %2696 = vmatprep.subr.bf16.mxu0 %v3182_v37  ;;  %2702 = vmatprep.subr.bf16.mxu1 %v3182_v37  ;;  %s1308_s10 = scalar_select %p1307_p11, 1, 0 }
0x1679   : > { %s1426_s14 = scalar_select %p1425_p7, 1, 0 }
0x167a   : > { %2557 = vmatmul.mubr.msk.f32.vlgmr.msra.gmra.mrb[0].mxu0 %vm1203_vm4, %v1196_v42  ;;  %v1309_v56 = vstv %s1308_s10  ;;  %s1542_s19 = scalar_select %p1541_p10, 1, 0 }
0x167b   : > { %2698 = vmatpush3.bf16.msra.mxu0 %v3551_v38  ;;  %2578 = vmatprep.mubr.msk.f32.mxu0 %vm3183_vm3, %v3184_v40  ;;  %vm3585_vm5 = vcmp.eq.s32.totalorder %v1309_v56, 1  ;;  %v1427_v19 = vstv %s1426_s14  ;;  %s1658_s27 = scalar_select %p1657_p13, 1, 0 }
0x167c   : > { %2699 = vmatprep.subr.bf16.mxu0 %v3182_v37  ;;  %vm1428_vm6 = vcmp.eq.s32.totalorder %v1427_v19, 1  ;;  %s1774_s17 = scalar_select %p1773_p1, 1, 0 }
0x167d   : > { %s1888_s10 = sadd.s32 5, %s3582_s13  ;;  %s2004_s14 = sadd.s32 6, %s3582_s13 }
0x167e   : > { %p1889_p0 = scmp.lt.s32.totalorder %s1888_s10, 12  ;;  %p2005_p6 = scmp.lt.s32.totalorder %s2004_s14, 12 }
0x167f   : > { %2701 = vmatpush3.bf16.msra.mxu0 %v3559_v41 }
0x1680   : > { %2708 = vmatprep.subr.bf16.mxu0 %v3182_v37  ;;  %s1890_s15 = scalar_select %p1889_p0, 1, 0 }
0x1681   : > { %s2006_s7 = scalar_select %p2005_p6, 1, 0 }
0x174d   : > { %v1273_v44 = vpop.f32.mrb[0].mxu0 }
0x174e   : > { %v1277_v45 = vadd.f32 %v1273_v44, %v1198_v43  ;;  %v2558_v46 = vpop.f32.mrb[1].mxu0  ;;  %v1543_v44 = vstv %s1542_s19 }
0x174f   : > { %vm1544_vm7 = vcmp.eq.s32.totalorder %v1543_v44, 1 }
0x1750   : > { %2893 = vtanh.f32 %v1277_v45  ;;  %v2339_v49 = vmul.f32 -1.442695, %v1277_v45 }
0x1752   : > { %2895 = vpow2.f32 %v2339_v49  ;;  %v2349_v49 = vld [vmem:[%s3411_s12 + $0x18] sm:$0xff] }
0x175a   : > { %v2894_v47 = vpop.eup %2893 }
0x175b   : > { %1291 = vrot.lane.b32.xlu0 %v2894_v47, %s3185_s18 }
0x175c   : > { %v2896_v50 = vpop.eup %2895 }
0x175d   : > { %v1281_v6 = vadd.f32 1.0, %v2896_v50 }
0x175f   : > { %1286 = vrot.lane.b32.xlu0 %v1197_v48, %s3185_s18  ;;  %2897 = vrcp.f32 %v1281_v6 }
0x1763   : > { %1311 = vrot.lane.b32.xlu0 %v1196_v42, %s3186_s8 }
0x1769   : > { %v2898_v8 = vpop.eup %2897 }
0x17cd   : > { %v1292_v5 = vpop.permute.xlu0 %1291 }
0x17ce   : > { %v1294_v9 = vmul.f32 %v2898_v8, %v1292_v5 }
0x17d0   : > { %1296 = vrot.lane.b32.xlu1 %v1294_v9, %s3185_s18 }
0x17d1   : > { %v1287_v51 = vpop.permute.xlu0 %1286 }
0x17d2   : > { %v1289_v52 = vmul.f32 %v2898_v8, %v1287_v51 }
0x17d5   : > { %v1312_v58 = vpop.permute.xlu0 %1311 }
0x1842   : > { %v1297_v53 = vpop.permute.xlu1 %1296 }
0x1843   : > { %v1299_v54 = vadd.f32 %v1297_v53, %v1289_v52 }
0x1845   : > { %2899 = vtanh.f32 %v1299_v54  ;;  %v1315_v14 = vsel %vm3585_vm5, %v1299_v54, %v1287_v51 }
0x184f   : > { %v2900_v55 = vpop.eup %2899 }
0x1850   : > { %1302 = vrot.lane.b32.xlu1 %v2900_v55, %s3185_s18 }
0x18c2   : > { %v1303_v57 = vpop.permute.xlu1 %1302 }
0x18c3   : > { %v1305_v59 = vmul.f32 %v2898_v8, %v1303_v57 }
0x18c5   : > { %v1314_v61 = vsel %vm3585_vm5, %v1305_v59, %v1312_v58 }
0x18c6   : > { %1317 = vrot.lane.b32.xlu1 %v1314_v61, %s3186_s8 }
0x1938   : > { %v1318_v62 = vpop.permute.xlu1 %1317 }
0x1939   : > { %1320 = vst.msk [vmem:[%s3421_s29] sm:$0xff] %vm1203_vm4, %v1318_v62  ;;  %2568 = vmatmul.mubr.msk.f32.vlgmr.msra.gmra.mrb[0].mxu1 %vm1203_vm4, %v1318_v62 }
0x193a   : > { %2704 = vmatpush3.bf16.msra.mxu1 %v3551_v38  ;;  %2589 = vmatprep.mubr.msk.f32.mxu1 %vm3183_vm3, %v3184_v40 }
0x193b   : > { %2705 = vmatprep.subr.bf16.mxu1 %v3182_v37 }
0x193e   : > { %2707 = vmatpush3.bf16.msra.mxu1 %v3559_v41 }
0x193f   : > { %2714 = vmatprep.subr.bf16.mxu1 %v3182_v37 }
0x1a0c   : > { %v1395_v0 = vpop.f32.mrb[0].mxu1 }
0x1a0d   : > { %v1399_v1 = vadd.f32 %v2341_v63, %v1395_v0  ;;  %v2569_v2 = vpop.f32.mrb[1].mxu1 }
0x1a0e   : > { %v2353_v2 = vld [vmem:[%s3411_s12 + $0x20] sm:$0xff] }
0x1a0f   : > { %2901 = vtanh.f32 %v1399_v1  ;;  %v2343_v4 = vmul.f32 -1.442695, %v1399_v1 }
0x1a11   : > { %2903 = vpow2.f32 %v2343_v4 }
0x1a19   : > { %v2902_v3 = vpop.eup %2901 }
0x1a1a   : > { %1409 = vrot.lane.b32.xlu0 %v2902_v3, %s3185_s18 }
0x1a1b   : > { %v2904_v7 = vpop.eup %2903 }
0x1a1c   : > { %v1403_v10 = vadd.f32 1.0, %v2904_v7 }
0x1a1e   : > { %2905 = vrcp.f32 %v1403_v10 }
0x1a28   : > { %v2906_v11 = vpop.eup %2905 }
0x1a29   : > { %v1407_v15 = vmul.f32 %v2906_v11, %v1315_v14 }
0x1a8c   : > { %v1410_v12 = vpop.permute.xlu0 %1409 }
0x1a8d   : > { %v1412_v13 = vmul.f32 %v2906_v11, %v1410_v12 }
0x1a8f   : > { %1414 = vrot.lane.b32.xlu1 %v1412_v13, %s3185_s18 }
0x1b01   : > { %v1415_v16 = vpop.permute.xlu1 %1414 }
0x1b02   : > { %v1417_v17 = vadd.f32 %v1415_v16, %v1407_v15 }
0x1b04   : > { %2907 = vtanh.f32 %v1417_v17  ;;  %v1430_v35 = vsel %vm1428_vm6, %v1417_v17, %v1315_v14 }
0x1b0e   : > { %v2908_v18 = vpop.eup %2907 }
0x1b0f   : > { %1420 = vrot.lane.b32.xlu0 %v2908_v18, %s3185_s18 }
0x1b81   : > { %v1421_v20 = vpop.permute.xlu0 %1420 }
0x1b82   : > { %v1423_v21 = vmul.f32 %v2906_v11, %v1421_v20 }
0x1b84   : > { %v1429_v22 = vsel %vm1428_vm6, %v1423_v21, %v1314_v61  ;;  %v1659_v61 = vstv %s1658_s27 }
0x1b85   : > { %1432 = vrot.lane.b32.xlu1 %v1429_v22, %s3186_s8  ;;  %vm1660_vm8 = vcmp.eq.s32.totalorder %v1659_v61, 1 }
0x1bf7   : > { %v1433_v23 = vpop.permute.xlu1 %1432 }
0x1bf8   : > { %2344 = vst.msk [vmem:[%s3421_s29 + $0x8] sm:$0xff] %vm1203_vm4, %v1433_v23  ;;  %2579 = vmatmul.mubr.msk.f32.vlgmr.msra.gmra.mrb[2].mxu0 %vm1203_vm4, %v1433_v23 }
0x1bf9   : > { %2710 = vmatpush3.bf16.msra.mxu0 %v3551_v38  ;;  %2600 = vmatprep.mubr.msk.f32.mxu0 %vm3183_vm3, %v3184_v40 }
0x1bfa   : > { %2711 = vmatprep.subr.bf16.mxu0 %v3182_v37 }
0x1bfd   : > { %2713 = vmatpush3.bf16.msra.mxu0 %v3559_v41 }
0x1bfe   : > { %2720 = vmatprep.subr.bf16.mxu0 %v3182_v37 }
0x1ccb   : > { %v1511_v25 = vpop.f32.mrb[2].mxu0 }
0x1ccc   : > { %v1515_v26 = vadd.f32 %v2345_v24, %v1511_v25  ;;  %v2580_v27 = vpop.f32.mrb[3].mxu0 }
0x1ccd   : > { %v2357_v27 = vld [vmem:[%s3411_s12 + $0x28] sm:$0xff] }
0x1cce   : > { %2909 = vtanh.f32 %v1515_v26  ;;  %v2347_v29 = vmul.f32 -1.442695, %v1515_v26 }
0x1cd0   : > { %2911 = vpow2.f32 %v2347_v29 }
0x1cd8   : > { %v2910_v28 = vpop.eup %2909 }
0x1cd9   : > { %1525 = vrot.lane.b32.xlu0 %v2910_v28, %s3185_s18 }
0x1cda   : > { %v2912_v30 = vpop.eup %2911 }
0x1cdb   : > { %v1519_v31 = vadd.f32 1.0, %v2912_v30 }
0x1cdd   : > { %2913 = vrcp.f32 %v1519_v31 }
0x1ce7   : > { %v2914_v32 = vpop.eup %2913 }
0x1ce8   : > { %v1523_v36 = vmul.f32 %v2914_v32, %v1430_v35 }
0x1d4b   : > { %v1526_v33 = vpop.permute.xlu0 %1525 }
0x1d4c   : > { %v1528_v34 = vmul.f32 %v2914_v32, %v1526_v33 }
0x1d4e   : > { %1530 = vrot.lane.b32.xlu1 %v1528_v34, %s3185_s18 }
0x1dc0   : > { %v1531_v39 = vpop.permute.xlu1 %1530 }
0x1dc1   : > { %v1533_v42 = vadd.f32 %v1531_v39, %v1523_v36 }
0x1dc3   : > { %2915 = vtanh.f32 %v1533_v42  ;;  %v1546_v56 = vsel %vm1544_vm7, %v1533_v42, %v1430_v35 }
0x1dcd   : > { %v2916_v43 = vpop.eup %2915 }
0x1dce   : > { %1536 = vrot.lane.b32.xlu0 %v2916_v43, %s3185_s18  ;;  %v1891_v43 = vstv %s1890_s15 }
0x1dcf   : > { %vm1892_vm10 = vcmp.eq.s32.totalorder %v1891_v43, 1 }
0x1e40   : > { %v1537_v45 = vpop.permute.xlu0 %1536 }
0x1e41   : > { %v1539_v46 = vmul.f32 %v2914_v32, %v1537_v45 }
0x1e43   : > { %v1545_v47 = vsel %vm1544_vm7, %v1539_v46, %v1429_v22  ;;  %v1775_v22 = vstv %s1774_s17 }
0x1e44   : > { %1548 = vrot.lane.b32.xlu1 %v1545_v47, %s3186_s8  ;;  %vm1776_vm9 = vcmp.eq.s32.totalorder %v1775_v22, 1 }
0x1eb6   : > { %v1549_v48 = vpop.permute.xlu1 %1548 }
0x1eb7   : > { %2348 = vst.msk [vmem:[%s3421_s29 + $0x10] sm:$0xff] %vm1203_vm4, %v1549_v48  ;;  %2590 = vmatmul.mubr.msk.f32.vlgmr.msra.gmra.mrb[2].mxu1 %vm1203_vm4, %v1549_v48  ;;  %v2361_v48 = vld [vmem:[%s3411_s12 + $0x30] sm:$0xff] }
0x1eb8   : > { %2716 = vmatpush3.bf16.msra.mxu1 %v3551_v38  ;;  %2611 = vmatprep.mubr.msk.f32.mxu1 %vm3183_vm3, %v3184_v40 }
0x1eb9   : > { %2717 = vmatprep.subr.bf16.mxu1 %v3182_v37 }
0x1ebc   : > { %2719 = vmatpush3.bf16.msra.mxu1 %v3559_v41 }
0x1ebd   : > { %2726 = vmatprep.subr.bf16.mxu1 %v3182_v37 }
0x1f8a   : > { %v1627_v50 = vpop.f32.mrb[2].mxu1 }
0x1f8b   : > { %v1631_v6 = vadd.f32 %v2349_v49, %v1627_v50  ;;  %v2591_v8 = vpop.f32.mrb[3].mxu1 }
0x1f8d   : > { %2917 = vtanh.f32 %v1631_v6  ;;  %v2351_v9 = vmul.f32 -1.442695, %v1631_v6 }
0x1f8f   : > { %2919 = vpow2.f32 %v2351_v9 }
0x1f97   : > { %v2918_v5 = vpop.eup %2917 }
0x1f98   : > { %1641 = vrot.lane.b32.xlu0 %v2918_v5, %s3185_s18 }
0x1f99   : > { %v2920_v51 = vpop.eup %2919 }
0x1f9a   : > { %v1635_v52 = vadd.f32 1.0, %v2920_v51 }
0x1f9c   : > { %2921 = vrcp.f32 %v1635_v52 }
0x1fa6   : > { %v2922_v53 = vpop.eup %2921 }
0x1fa7   : > { %v1639_v57 = vmul.f32 %v2922_v53, %v1546_v56 }
0x200a   : > { %v1642_v54 = vpop.permute.xlu0 %1641 }
0x200b   : > { %v1644_v55 = vmul.f32 %v2922_v53, %v1642_v54 }
0x200d   : > { %1646 = vrot.lane.b32.xlu1 %v1644_v55, %s3185_s18 }
0x207f   : > { %v1647_v58 = vpop.permute.xlu1 %1646 }
0x2080   : > { %v1649_v59 = vadd.f32 %v1647_v58, %v1639_v57 }
0x2082   : > { %2923 = vtanh.f32 %v1649_v59  ;;  %v1662_v17 = vsel %vm1660_vm8, %v1649_v59, %v1546_v56 }
0x208c   : > { %v2924_v60 = vpop.eup %2923 }
0x208d   : > { %1652 = vrot.lane.b32.xlu0 %v2924_v60, %s3185_s18  ;;  %v2007_v60 = vstv %s2006_s7 }
0x208e   : > { %vm2008_vm11 = vcmp.eq.s32.totalorder %v2007_v60, 1 }
0x20ff   : > { %v1653_v62 = vpop.permute.xlu0 %1652 }
0x2100   : > { %v1655_v63 = vmul.f32 %v2922_v53, %v1653_v62 }
0x2102   : > { %v1661_v0 = vsel %vm1660_vm8, %v1655_v63, %v1545_v47 }
0x2103   : > { %1664 = vrot.lane.b32.xlu1 %v1661_v0, %s3186_s8 }
0x2175   : > { %v1665_v1 = vpop.permute.xlu1 %1664 }
0x2176   : > { %2352 = vst.msk [vmem:[%s3421_s29 + $0x18] sm:$0xff] %vm1203_vm4, %v1665_v1  ;;  %2601 = vmatmul.mubr.msk.f32.vlgmr.msra.gmra.mrb[4].mxu0 %vm1203_vm4, %v1665_v1  ;;  %v2365_v1 = vld [vmem:[%s3411_s12 + $0x38] sm:$0xff]  ;;  %s2120_s12 = sadd.s32 7, %s3582_s13 }
0x2177   : > { %2722 = vmatpush3.bf16.msra.mxu0 %v3551_v38  ;;  %2622 = vmatprep.mubr.msk.f32.mxu0 %vm3183_vm3, %v3184_v40  ;;  %p2121_p8 = scmp.lt.s32.totalorder %s2120_s12, 12 }
0x2178   : > { %2723 = vmatprep.subr.bf16.mxu0 %v3182_v37 }
0x2179   : > { %s2122_s19 = scalar_select %p2121_p8, 1, 0 }
0x217b   : > { %2725 = vmatpush3.bf16.msra.mxu0 %v3559_v41 }
0x2249   : > { %v1743_v3 = vpop.f32.mrb[4].mxu0 }
0x224a   : > { %v1747_v4 = vadd.f32 %v2353_v2, %v1743_v3  ;;  %v2602_v7 = vpop.f32.mrb[5].mxu0 }
0x224c   : > { %2925 = vtanh.f32 %v1747_v4  ;;  %v2355_v11 = vmul.f32 -1.442695, %v1747_v4 }
0x224e   : > { %2927 = vpow2.f32 %v2355_v11 }
0x2256   : > { %v2926_v10 = vpop.eup %2925 }
0x2257   : > { %1757 = vrot.lane.b32.xlu0 %v2926_v10, %s3185_s18 }
0x2258   : > { %v2928_v12 = vpop.eup %2927 }
0x2259   : > { %v1751_v13 = vadd.f32 1.0, %v2928_v12 }
0x225b   : > { %2929 = vrcp.f32 %v1751_v13 }
0x2265   : > { %v2930_v14 = vpop.eup %2929 }
0x2266   : > { %v1755_v18 = vmul.f32 %v2930_v14, %v1662_v17 }
0x22c9   : > { %v1758_v15 = vpop.permute.xlu0 %1757 }
0x22ca   : > { %v1760_v16 = vmul.f32 %v2930_v14, %v1758_v15 }
0x22cc   : > { %1762 = vrot.lane.b32.xlu1 %v1760_v16, %s3185_s18 }
0x233e   : > { %v1763_v19 = vpop.permute.xlu1 %1762 }
0x233f   : > { %v1765_v20 = vadd.f32 %v1763_v19, %v1755_v18 }
0x2341   : > { %2931 = vtanh.f32 %v1765_v20 }
0x234b   : > { %v2932_v21 = vpop.eup %2931 }
0x234c   : > { %1768 = vrot.lane.b32.xlu0 %v2932_v21, %s3185_s18 }
0x23be   : > { %v1769_v23 = vpop.permute.xlu0 %1768 }
0x23bf   : > { %v1771_v24 = vmul.f32 %v2930_v14, %v1769_v23 }
0x23c1   : > { %v1777_v25 = vsel %vm1776_vm9, %v1771_v24, %v1661_v0 }
0x23c2   : > { %1780 = vrot.lane.b32.xlu1 %v1777_v25, %s3186_s8 }
0x2434   : > { %v1781_v26 = vpop.permute.xlu1 %1780 }
0x2435   : > { %2356 = vst.msk [vmem:[%s3421_s29 + $0x20] sm:$0xff] %vm1203_vm4, %v1781_v26  ;;  %2612 = vmatmul.mubr.msk.f32.vlgmr.msra.gmra.mrb[4].mxu1 %vm1203_vm4, %v1781_v26 }
0x2436   : > { %2728 = vmatpush3.bf16.msra.mxu1 %v3551_v38  ;;  %2633 = vmatprep.mubr.msk.f32.mxu1 %vm3183_vm3, %v3184_v40 }
0x2437   : > { %2729 = vmatprep.subr.bf16.mxu1 %v3182_v37  ;;  %v1778_v37 = vsel %vm1776_vm9, %v1765_v20, %v1662_v17  ;;  %v2123_v20 = vstv %s2122_s19 }
0x2438   : > { %vm2124_vm12 = vcmp.eq.s32.totalorder %v2123_v20, 1 }
0x243a   : > { %2731 = vmatpush3.bf16.msra.mxu1 %v3559_v41 }
0x2508   : > { %v1859_v28 = vpop.f32.mrb[4].mxu1 }
0x2509   : > { %v1863_v29 = vadd.f32 %v2357_v27, %v1859_v28  ;;  %v2613_v30 = vpop.f32.mrb[5].mxu1 }
0x250b   : > { %2933 = vtanh.f32 %v1863_v29  ;;  %v2359_v32 = vmul.f32 -1.442695, %v1863_v29 }
0x250d   : > { %2935 = vpow2.f32 %v2359_v32 }
0x2515   : > { %v2934_v31 = vpop.eup %2933 }
0x2516   : > { %1873 = vrot.lane.b32.xlu0 %v2934_v31, %s3185_s18 }
0x2517   : > { %v2936_v33 = vpop.eup %2935 }
0x2518   : > { %v1867_v38 = vadd.f32 1.0, %v2936_v33 }
0x251a   : > { %2937 = vrcp.f32 %v1867_v38 }
0x2524   : > { %v2938_v34 = vpop.eup %2937 }
0x2525   : > { %v1871_v41 = vmul.f32 %v2938_v34, %v1778_v37 }
0x2588   : > { %v1874_v40 = vpop.permute.xlu0 %1873 }
0x2589   : > { %v1876_v35 = vmul.f32 %v2938_v34, %v1874_v40 }
0x258b   : > { %1878 = vrot.lane.b32.xlu1 %v1876_v35, %s3185_s18 }
0x25fd   : > { %v1879_v36 = vpop.permute.xlu1 %1878 }
0x25fe   : > { %v1881_v39 = vadd.f32 %v1879_v36, %v1871_v41 }
0x2600   : > { %2939 = vtanh.f32 %v1881_v39  ;;  %v1894_v55 = vsel %vm1892_vm10, %v1881_v39, %v1778_v37 }
0x260a   : > { %v2940_v42 = vpop.eup %2939 }
0x260b   : > { %1884 = vrot.lane.b32.xlu0 %v2940_v42, %s3185_s18 }
0x267d   : > { %v1885_v44 = vpop.permute.xlu0 %1884 }
0x267e   : > { %v1887_v45 = vmul.f32 %v2938_v34, %v1885_v44 }
0x2680   : > { %v1893_v46 = vsel %vm1892_vm10, %v1887_v45, %v1777_v25 }
0x2681   : > { %1896 = vrot.lane.b32.xlu1 %v1893_v46, %s3186_s8 }
0x26f3   : > { %v1897_v47 = vpop.permute.xlu1 %1896 }
0x26f4   : > { %2360 = vst.msk [vmem:[%s3421_s29 + $0x28] sm:$0xff] %vm1203_vm4, %v1897_v47  ;;  %2623 = vmatmul.mubr.msk.f32.vlgmr.msra.gmra.mrb[6].mxu0 %vm1203_vm4, %v1897_v47 }
0x27c7   : > { %v1975_v49 = vpop.f32.mrb[6].mxu0 }
0x27c8   : > { %v1979_v50 = vadd.f32 %v2361_v48, %v1975_v49  ;;  %v2624_v6 = vpop.f32.mrb[7].mxu0 }
0x27ca   : > { %2941 = vtanh.f32 %v1979_v50  ;;  %v2363_v5 = vmul.f32 -1.442695, %v1979_v50 }
0x27cc   : > { %2943 = vpow2.f32 %v2363_v5 }
0x27d4   : > { %v2942_v8 = vpop.eup %2941 }
0x27d5   : > { %1989 = vrot.lane.b32.xlu0 %v2942_v8, %s3185_s18 }
0x27d6   : > { %v2944_v9 = vpop.eup %2943 }
0x27d7   : > { %v1983_v51 = vadd.f32 1.0, %v2944_v9 }
0x27d9   : > { %2945 = vrcp.f32 %v1983_v51 }
0x27e3   : > { %v2946_v52 = vpop.eup %2945 }
0x27e4   : > { %v1987_v56 = vmul.f32 %v2946_v52, %v1894_v55 }
0x2847   : > { %v1990_v53 = vpop.permute.xlu0 %1989 }
0x2848   : > { %v1992_v54 = vmul.f32 %v2946_v52, %v1990_v53 }
0x284a   : > { %1994 = vrot.lane.b32.xlu1 %v1992_v54, %s3185_s18 }
0x28bc   : > { %v1995_v57 = vpop.permute.xlu1 %1994 }
0x28bd   : > { %v1997_v58 = vadd.f32 %v1995_v57, %v1987_v56 }
0x28bf   : > { %2947 = vtanh.f32 %v1997_v58  ;;  %v2010_v16 = vsel %vm2008_vm11, %v1997_v58, %v1894_v55 }
0x28c9   : > { %v2948_v59 = vpop.eup %2947 }
0x28ca   : > { %2000 = vrot.lane.b32.xlu0 %v2948_v59, %s3185_s18 }
0x293c   : > { %v2001_v61 = vpop.permute.xlu0 %2000 }
0x293d   : > { %v2003_v62 = vmul.f32 %v2946_v52, %v2001_v61 }
0x293f   : > { %v2009_v63 = vsel %vm2008_vm11, %v2003_v62, %v1893_v46 }
0x2940   : > { %2012 = vrot.lane.b32.xlu1 %v2009_v63, %s3186_s8 }
0x29b2   : > { %v2013_v0 = vpop.permute.xlu1 %2012 }
0x29b3   : > { %2364 = vst.msk [vmem:[%s3421_s29 + $0x30] sm:$0xff] %vm1203_vm4, %v2013_v0  ;;  %2634 = vmatmul.mubr.msk.f32.vlgmr.msra.gmra.mrb[6].mxu1 %vm1203_vm4, %v2013_v0 }
0x2a86   : > { %v2091_v2 = vpop.f32.mrb[6].mxu1 }
0x2a87   : > { %v2095_v3 = vadd.f32 %v2365_v1, %v2091_v2  ;;  %v2635_v4 = vpop.f32.mrb[7].mxu1 }
0x2a89   : > { %2949 = vtanh.f32 %v2095_v3  ;;  %v2367_v10 = vmul.f32 -1.442695, %v2095_v3 }
0x2a8b   : > { %2951 = vpow2.f32 %v2367_v10 }
0x2a93   : > { %v2950_v7 = vpop.eup %2949 }
0x2a94   : > { %2105 = vrot.lane.b32.xlu0 %v2950_v7, %s3185_s18 }
0x2a95   : > { %v2952_v11 = vpop.eup %2951 }
0x2a96   : > { %v2099_v12 = vadd.f32 1.0, %v2952_v11 }
0x2a98   : > { %2953 = vrcp.f32 %v2099_v12 }
0x2aa2   : > { %v2954_v13 = vpop.eup %2953 }
0x2aa3   : > { %v2103_v17 = vmul.f32 %v2954_v13, %v2010_v16 }
0x2b06   : > { %v2106_v14 = vpop.permute.xlu0 %2105 }
0x2b07   : > { %v2108_v15 = vmul.f32 %v2954_v13, %v2106_v14 }
0x2b09   : > { %2110 = vrot.lane.b32.xlu1 %v2108_v15, %s3185_s18 }
0x2b7b   : > { %v2111_v18 = vpop.permute.xlu1 %2110 }
0x2b7c   : > { %v2113_v19 = vadd.f32 %v2111_v18, %v2103_v17 }
0x2b7e   : > { %2955 = vtanh.f32 %v2113_v19  ;;  %v2126_v22 = vsel %vm2124_vm12, %v2113_v19, %v2010_v16 }
0x2b88   : > { %v2956_v21 = vpop.eup %2955 }
0x2b89   : > { %2116 = vrot.lane.b32.xlu0 %v2956_v21, %s3185_s18 }
0x2b8d   : > { %2135 = vrot.lane.b32.xlu0 %v2126_v22, %s3187_s20 }
0x2bfb   : > { %v2117_v23 = vpop.permute.xlu0 %2116 }
0x2bfc   : > { %v2119_v24 = vmul.f32 %v2954_v13, %v2117_v23 }
0x2bfe   : > { %v2125_v25 = vsel %vm2124_vm12, %v2119_v24, %v2009_v63 }
0x2bff   : > { %2128 = vrot.lane.b32.xlu1 %v2125_v25, %s3186_s8  ;;  %v2136_v26 = vpop.permute.xlu0 %2135 }
0x2c00   : > { %2138 = vst.msk [vmem:[#allocation3] sm:$0xff] %vm1203_vm4, %v2136_v26 }
0x2c07   : > { %v2141_v27 = vld [vmem:[#allocation3] sm:$0xff] }
0x2c08   : > { %2142 = vst.msk [vmem:[#allocation13] sm:$0xff] %vm1203_vm4, %v2141_v27 }
0x2c71   : > { %v2129_v28 = vpop.permute.xlu1 %2128 }
0x2c72   : > { %2368 = vst.msk [vmem:[%s3421_s29 + $0x38] sm:$0xff] %vm1203_vm4, %v2129_v28  ;;  %2133 = vst.msk [vmem:[#allocation2] sm:$0xff] %vm1203_vm4, %v2129_v28 }
0x2c79   : > { %v2139_v29 = vld [vmem:[#allocation2] sm:$0xff] }
0x2c7a   : > { %2140 = vst.msk [vmem:[#allocation11] sm:$0xff] %vm1203_vm4, %v2139_v29 }
0x2c7b PF: > { %s3188_s18 = smov [#allocation11]   ;;  %s2379_s8 = sshll.u32 %s3249_s25, 10 }
0x2c7c   : > { %s2171_s13 = sshll.u32 %s3188_s18, 4  ;;  %s3707_s17 = scalar_lea.hbm %s3798_s4, %s2379_s8  ;;  %s2172_s13 = int_to_ptr.vmem [resolvable:$true] %s2171_s13 }
0x2c7d   : > { %s3043_s10 = scalar_lea.vmem %s2172_s13, 128  ;;  %p3818_p5 = scmp.eq.s32.totalorder %s3249_s25, 1 }
0x2c7e   : > { %p3044_p4 = scmp.ne.s32.totalorder %s2172_s13, %s3043_s10  ;;  %p3050_p3 = scmp.lt.s32.totalorder %s2172_s13, %s2172_s13 }
0x2c7f   : > { %p3051_p2 = scmp.lt.s32.totalorder %s3043_s10, %s3043_s10 }
0x2c80   : > { %p3045_p9 = pnand %p3044_p4, %p3818_p5 }
0x2c81   : > { %p3052_p11 = por %p3051_p2, %p3050_p3 }
0x2c82   : > { %p3046_p12 = pneg %p3045_p9 }
0x2c84   : > { %p3053_p7 = pnand %p3052_p11, %p3046_p12 }
0x2c86   : > { %3056 = shalt.err (!%p3053_p7)
}
0x2c87   : > { %s3057_s7 = scalar_lea.hbm %s3799_s5, 128  ;;  %p3819_p13 = pmov %p3818_p5 }
0x2c88   : > { %p3058_p10 = scmp.ne.s32.totalorder %s3799_s5, %s3057_s7  ;;  %p3063_p6 = scmp.lt.u32.totalorder %s3057_s7, %s3799_s5 }
0x2c8a   : > { %p3059_p1 = pnand %p3058_p10, %p3819_p13 }
0x2c8c   : > { %p3060_p0 = pneg %p3059_p1 }
0x2c8e   : > { %p3065_p8 = pnand %p3063_p6, %p3060_p0 }
0x2c90   : > { %3068 = shalt.err (!%p3065_p8)
}
0x2c91   : > { %p3820_p4 = pmov %p3818_p5  ;;  %s2157_s16 = sshll.u32 %s3421_s29, 4  ;;  %s3728_s16 = int_to_ptr.vmem [resolvable:$true] %s2157_s16 }
0x2c92   : > { %s2144_s10 = scalar_lea.sflag [#allocation6], %s3407_s30  ;;  %s3069_s15 = scalar_lea.vmem %s3728_s16, 1024 }
0x2c93   : > { %2744 = dma.vmem_to_hbm [thread:$0]  (%p3820_p4), %s2172_s13, 128, %s3799_s5, [#allocation12]  }
0x2c94   : > { %p3070_p5 = scmp.ne.s32.totalorder %s3728_s16, %s3069_s15  ;;  %p3821_p9 = scmp.ne.s32.totalorder %s3809_s9, 0 }
0x2c95   : > { %s3189_s14 = smov [#allocation10]  }
0x2c96   : > { %p3071_p12 = pnand %p3070_p5, %p3821_p9  ;;  %s3073_s7 = sshll.u32 %s3189_s14, 4  ;;  %s3074_s7 = int_to_ptr.vmem [resolvable:$false] %s3073_s7 }
0x2c97   : > { %s3075_s12 = scalar_lea.vmem %s3074_s7, 2048  ;;  %p3076_p2 = scmp.lt.s32.totalorder %s3728_s16, %s3074_s7 }
0x2c98   : > { %p3072_p3 = pneg %p3071_p12  ;;  %p3077_p11 = scmp.lt.s32.totalorder %s3075_s12, %s3069_s15 }
0x2c9a   : > { %p3078_p7 = por %p3077_p11, %p3076_p2 }
0x2c9c   : > { %p3079_p10 = pnand %p3078_p7, %p3072_p3 }
0x2c9e   : > { %3082 = shalt.err (!%p3079_p10)
}
0x2c9f   : > { %s3083_s29 = scalar_lea.hbm %s3707_s17, 1024  ;;  %s3087_s20 = scalar_lea.hbm %s3798_s4, 2048 }
0x2ca0   : > { %p3084_p13 = scmp.ne.s32.totalorder %s3707_s17, %s3083_s29  ;;  %p3088_p6 = scmp.lt.u32.totalorder %s3707_s17, %s3798_s4 }
0x2ca1   : > { %p3089_p8 = scmp.lt.u32.totalorder %s3087_s20, %s3083_s29  ;;  %p3091_p5 = scmp.lt.u32.totalorder %s3083_s29, %s3707_s17 }
0x2ca2   : > { %p3085_p1 = pnand %p3084_p13, %p3821_p9 }
0x2ca3   : > { %p3090_p4 = por %p3089_p8, %p3088_p6 }
0x2ca4   : > { %p3086_p0 = pneg %p3085_p1 }
0x2ca5   : > { %p3092_p12 = por %p3091_p5, %p3090_p4 }
0x2ca7   : > { %p3093_p3 = pnand %p3092_p12, %p3086_p0 }
0x2ca9   : > { %3096 = shalt.err (!%p3093_p3)
}
0x2caa   : > { %s3190_s27 = smov 128   ;;  %s3191_s15 = smov 8  }
0x2cab   : > { %2742 = dma.vmem_to_hbm [thread:$0]  (%p3821_p9), %s3728_s16, 1024, %s3707_s17, %s2144_s10, %s3190_s27, %s3190_s27, %s3191_s15  }
0x2cac   : > { %s3192_s14 = smov [#allocation13]   ;;  %p3822_p11 = scmp.eq.s32.totalorder %s3249_s25, 1 }
0x2cad   : > { %s2182_s7 = sshll.u32 %s3192_s14, 4  ;;  %s2183_s7 = int_to_ptr.vmem [resolvable:$true] %s2182_s7 }
0x2cae   : > { %s3097_s12 = scalar_lea.vmem %s2183_s7, 128  ;;  %p3104_p13 = scmp.lt.s32.totalorder %s2183_s7, %s2183_s7 }
0x2caf   : > { %p3098_p2 = scmp.ne.s32.totalorder %s2183_s7, %s3097_s12  ;;  %p3105_p1 = scmp.lt.s32.totalorder %s3097_s12, %s3097_s12 }
0x2cb1   : > { %p3099_p7 = pnand %p3098_p2, %p3822_p11  ;;  %p3106_p0 = por %p3105_p1, %p3104_p13 }
0x2cb3   : > { %p3100_p10 = pneg %p3099_p7 }
0x2cb5   : > { %p3107_p6 = pnand %p3106_p0, %p3100_p10 }
0x2cb7   : > { %3110 = shalt.err (!%p3107_p6)
}
0x2cb8   : > { %s3111_s9 = scalar_lea.hbm %s3800_s6, 128  ;;  %p3823_p8 = pmov %p3822_p11 }
0x2cb9   : > { %p3112_p9 = scmp.ne.s32.totalorder %s3800_s6, %s3111_s9  ;;  %p3117_p12 = scmp.lt.u32.totalorder %s3111_s9, %s3800_s6 }
0x2cbb   : > { %p3113_p4 = pnand %p3112_p9, %p3823_p8 }
0x2cbd   : > { %p3114_p5 = pneg %p3113_p4 }
0x2cbf   : > { %p3119_p3 = pnand %p3117_p12, %p3114_p5 }
0x2cc1   : > { %3122 = shalt.err (!%p3119_p3)
}
0x2cc2   : > { %p3824_p2 = pmov %p3823_p8 }
0x2cc4   : > { %2746 = dma.vmem_to_hbm [thread:$0]  (%p3824_p2), %s2183_s7, 128, %s3800_s6, [#allocation12]  }
0x2cc5   : > { %p3825_p11 = pmov %p3824_p2 }
0x2cc6   : > { %p3826_p7 = pmov %p3824_p2 }
0x2cc7   : > { %3148 = dma.done.wait (%p3825_p11), [#allocation12], 256  }
0x2cc8   : > { %3150 = vsyncadd (%p3826_p7), [#allocation12], 4294967040 }
0x2cc9 PF: > { %s2202_s18 = sand.u32 1, %s3157_s21   ;;  %p3827_p10 = scmp.ne.s32.totalorder %s3805_s28, 0 }
0x2cca   : > { %p3828_p13 = scmp.ge.s32.totalorder %s3169_s24, 2  ;;  %s2203_s8 = scalar_lea.sflag [#allocation6], %s2202_s18 }
0x2ccc   : > { %p2764_p1 = pnand %p3828_p13, %p3827_p10 }
0x2cce   : > { %3152 = dma.done.wait (!%p2764_p1), %s2203_s8, 1024  }
0x2ccf   : > { %3154 = vsyncadd (!%p2764_p1), %s2203_s8, 4294966272  ;;  %p22_p0 = scmp.ge.s32.totalorder %s3342_s26, 4   ;;  %s3829_s21 = smov %s3161_s22 }
0x2cd0   : > { %s3830_s22 = smov %s3165_s23  ;;  %s3831_s23 = smov %s3358_s11 }
0x2cd1   : > { %s3832_s24 = smov %s3342_s26  ;;  %24 = sbr.rel (!%p22_p0) target bundleno = 7 (0x7), region = 145 }
0x2cd8   :  { %2208 = vsyncpa [#allocation5], 1 }
0x2cd9   :  { %2210 = vsyncpa [#allocation5 + $0x1], 1 }
0x2cda   :  { %2211 = vsyncpa [#allocation8], 1 }
0x2cdb   :  { %2212 = vsyncpa [#allocation6], 1 }
0x2cdc   :  { %2214 = vsyncpa [#allocation6 + $0x1], 1 }
0x2cdd   :  { %2215 = vsyncpa [#allocation12], 1 }

</bundles_post_ra>
